<compile_context>
chip_gen: v7x
topology: tpu7x:2x2x1
jax: 0.10.0
libtpu: 0.0.40
codegen_flags: <defaults>
</compile_context>

<pallas_src>
from functools import partial

import jax
import jax.numpy as jnp
from jax.experimental import pallas as pl
from jax.experimental.pallas import tpu as pltpu


def _round_up(v, m):
    return (v + m - 1) // m * m


# ----------------------------------------------------------------------------------
# Pallas kernel: one ConvGRUCell step for a single batch element.
# ----------------------------------------------------------------------------------
def _convgru_cell_kernel(x_ref, h_ref, wx3_ref, wh_ur_ref, wo_h_ref,
                         b3_ref, mask_ref, out_ref, *, K, W):
    """Layout: channels on sublanes, flattened spatial (H*W) on lanes.

      x_ref    : (1, Cinp, HW)    input, channels zero-padded to a multiple of 8
      h_ref    : (1, Chp,  HW)    previous hidden state, channels zero-padded
      wx3_ref  : (3Ch, K*K*Cinp)  fused [update; reset; out] x-side weights (im2col)
      wh_ur_ref: (2Ch, K*K*Chp)   fused [update; reset] h-side weights
      wo_h_ref : ( Ch, K*K*Chp)   out-gate h-side weights (applied to h * reset)
      b3_ref   : (3Ch, 1)         fused biases
      mask_ref : (K*K, HW)        per-tap spatial validity mask (== SAME zero padding)
      out_ref  : (1, Ch, HW)      new hidden state (lane-dense, flattened NCHW)
    """
    Ch = out_ref.shape[1]
    HW = out_ref.shape[2]
    Chp = h_ref.shape[1]
    p = K // 2

    x = x_ref[0]              # (Cinp, HW)
    h = h_ref[0]              # (Chp,  HW)
    masks = mask_ref[...]     # (K*K, HW)

    # Flattened tap offsets: tap t = ky*K + kx  ->  off = (ky - p)*W + (kx - p).
    offs = [(ky - p) * W + (kx - p) for ky in range(K) for kx in range(K)]

    def shift_lanes(v, off):
        # s[:, i] = v[:, (i + off) mod HW]; wrapped entries get masked to zero below.
        return jnp.concatenate([v[:, off:], v[:, :off]], axis=-1)

    def build_patch(v):
        # im2col in registers: (K*K*Cp, HW).  Row block t holds v shifted by tap t
        # with out-of-image positions zeroed (this *is* the SAME zero padding).
        taps = []
        for t, off in enumerate(offs):
            if off == 0:
                taps.append(v)                                  # center tap: all valid
            else:
                taps.append(shift_lanes(v, off) * masks[t:t + 1, :])
        return jnp.concatenate(taps, axis=0)

    # ---- update / reset gates + x-part of the out gate: two deep matmuls ----------
    patch_x = build_patch(x)                                        # (K*K*Cinp, HW)
    a_x = jnp.dot(wx3_ref[...], patch_x,
                  preferred_element_type=jnp.float32)               # (3Ch, HW)
    a_x = a_x + b3_ref[...]                                         # biases folded once

    patch_h = build_patch(h)                                        # (K*K*Chp, HW)
    a_h = jnp.dot(wh_ur_ref[...], patch_h,
                  preferred_element_type=jnp.float32)               # (2Ch, HW)

    update = jax.nn.sigmoid(a_x[0:Ch] + a_h[0:Ch])                  # (Ch, HW)
    reset = jax.nn.sigmoid(a_x[Ch:2 * Ch] + a_h[Ch:2 * Ch])         # (Ch, HW)

    # ---- out gate: conv over (h * reset); its x-part is already in a_x ------------
    h_real = h[0:Ch]
    hr = h_real * reset
    if Chp != Ch:  # keep the in-register tap concat sublane-aligned
        hr = jnp.concatenate([hr, jnp.zeros((Chp - Ch, HW), jnp.float32)], axis=0)
    patch_hr = build_patch(hr)                                      # (K*K*Chp, HW)
    a_o = jnp.dot(wo_h_ref[...], patch_hr,
                  preferred_element_type=jnp.float32)               # (Ch, HW)
    out_inputs = jnp.tanh(a_x[2 * Ch:3 * Ch] + a_o)

    # ---- GRU blend; lane-dense store, already flattened NCHW ----------------------
    out_ref[0] = (h_real * (1.0 - update) + out_inputs * update).astype(out_ref.dtype)


# ----------------------------------------------------------------------------------
# Wrapper-side preprocessing (weight fusion to im2col layout, tap masks).
# ----------------------------------------------------------------------------------
def _fuse_weights(w_u, w_r, w_o, cin, ch, k, cinp, chp):
    """OIHW conv weights -> fused matrices matching the in-kernel patch row layout
    (row index of the patch = tap*(Cp) + channel)."""
    def x_part(w):
        wx = jnp.transpose(w[:, :cin], (0, 2, 3, 1))                 # (Ch, K, K, Cin)
        wx = jnp.pad(wx, ((0, 0), (0, 0), (0, 0), (0, cinp - cin)))
        return wx.reshape(ch, k * k * cinp)

    def h_part(w):
        wh = jnp.transpose(w[:, cin:], (0, 2, 3, 1))                 # (Ch, K, K, Ch)
        wh = jnp.pad(wh, ((0, 0), (0, 0), (0, 0), (0, chp - ch)))
        return wh.reshape(ch, k * k * chp)

    wx3 = jnp.concatenate([x_part(w_u), x_part(w_r), x_part(w_o)], axis=0)  # (3Ch, K*K*Cinp)
    wh_ur = jnp.concatenate([h_part(w_u), h_part(w_r)], axis=0)             # (2Ch, K*K*Chp)
    wo_h = h_part(w_o)                                                      # ( Ch, K*K*Chp)
    return wx3, wh_ur, wo_h


def _tap_masks(h, w, k):
    """(K*K, H*W) float mask: 1 where the tap reads inside the image, 0 in the halo."""
    p = k // 2
    idx = jnp.arange(h * w, dtype=jnp.int32)
    y, x = idx // w, idx % w
    rows = []
    for ky in range(k):
        for kx in range(k):
            ry, rx = ky - p, kx - p
            valid = (y + ry >= 0) & (y + ry < h) & (x + rx >= 0) & (x + rx < w)
            rows.append(valid)
    return jnp.stack(rows, axis=0).astype(jnp.float32)


# ----------------------------------------------------------------------------------
# One ConvGRUCell over the batch (grid = batch).
# ----------------------------------------------------------------------------------
def convgru_cell_pallas(x_nchw, h_nchw, prm):
    B, cin, H, W = x_nchw.shape
    ch = h_nchw.shape[1]
    k = prm["kernel_size"]
    HW = H * W
    cinp = _round_up(cin, 8)
    chp = _round_up(ch, 8)

    # Flatten spatial onto lanes (free: NCHW is already channel-major); pad channels
    # up to a sublane multiple so the in-kernel tap concat stays aligned.
    x_flat = x_nchw.reshape(B, cin, HW)
    h_flat = h_nchw.reshape(B, ch, HW)
    if cinp != cin:
        x_flat = jnp.pad(x_flat, ((0, 0), (0, cinp - cin), (0, 0)))
    if chp != ch:
        h_flat = jnp.pad(h_flat, ((0, 0), (0, chp - ch), (0, 0)))

    wx3, wh_ur, wo_h = _fuse_weights(prm["w_u"], prm["w_r"], prm["w_o"],
                                     cin, ch, k, cinp, chp)
    bias3 = jnp.concatenate([prm["b_u"], prm["b_r"], prm["b_o"]]).reshape(3 * ch, 1)
    masks = _tap_masks(H, W, k)

    out = pl.pallas_call(
        partial(_convgru_cell_kernel, K=k, W=W),
        out_shape=jax.ShapeDtypeStruct((B, ch, HW), jnp.float32),
        grid_spec=pltpu.PrefetchScalarGridSpec(
            num_scalar_prefetch=0,
            grid=(B,),
            in_specs=[
                pl.BlockSpec((1, cinp, HW), lambda b: (b, 0, 0)),
                pl.BlockSpec((1, chp, HW), lambda b: (b, 0, 0)),
                pl.BlockSpec((3 * ch, k * k * cinp), lambda b: (0, 0)),
                pl.BlockSpec((2 * ch, k * k * chp), lambda b: (0, 0)),
                pl.BlockSpec((ch, k * k * chp), lambda b: (0, 0)),
                pl.BlockSpec((3 * ch, 1), lambda b: (0, 0)),
                pl.BlockSpec((k * k, HW), lambda b: (0, 0)),
            ],
            out_specs=pl.BlockSpec((1, ch, HW), lambda b: (b, 0, 0)),
        ),
        compiler_params=pltpu.CompilerParams(dimension_semantics=("parallel",)),
    )(x_flat, h_flat, wx3, wh_ur, wo_h, bias3, masks)

    return out.reshape(B, ch, H, W)     # lane-dense block is already flattened NCHW


# ----------------------------------------------------------------------------------
# Multi-layer ConvGRU forward (mirrors ConvGRU.forward): NCHW in, list of NCHW out.
# ----------------------------------------------------------------------------------
def convgru_forward(x_nchw, params, hidden=None):
    B, _, H, W = x_nchw.shape
    n_layers = len(params)
    if not hidden:
        hidden = [None] * n_layers

    input_ = x_nchw
    upd_hidden = []
    for i, prm in enumerate(params):
        h = hidden[i]
        if h is None:
            h = jnp.zeros((B, prm["hidden_size"], H, W), jnp.float32)
        new_h = convgru_cell_pallas(input_, h, prm)
        upd_hidden.append(new_h)
        input_ = new_h
    return upd_hidden


# ----------------------------------------------------------------------------------
# Deterministic parameter init (orthogonal weights like init.orthogonal, zero biases).
# ----------------------------------------------------------------------------------
def init_convgru_params(key, input_size, hidden_sizes, kernel_sizes, n_layers):
    if not isinstance(hidden_sizes, (list, tuple)):
        hidden_sizes = [hidden_sizes] * n_layers
    if not isinstance(kernel_sizes, (list, tuple)):
        kernel_sizes = [kernel_sizes] * n_layers

    ortho = jax.nn.initializers.orthogonal()
    params = []
    for i in range(n_layers):
        cin = input_size if i == 0 else hidden_sizes[i - 1]
        ch = hidden_sizes[i]
        k = kernel_sizes[i]
        ct = cin + ch
        keys = jax.random.split(jax.random.fold_in(key, i), 3)

        def make_w(kk):
            # PyTorch init.orthogonal acts on (Cout, Cin*K*K); keep OIHW storage.
            return ortho(kk, (ch, ct * k * k), jnp.float32).reshape(ch, ct, k, k)

        params.append(dict(
            hidden_size=ch, kernel_size=k,
            w_u=make_w(keys[0]), w_r=make_w(keys[1]), w_o=make_w(keys[2]),
            b_u=jnp.zeros((ch,), jnp.float32),
            b_r=jnp.zeros((ch,), jnp.float32),
            b_o=jnp.zeros((ch,), jnp.float32),
        ))
    return params


# ----------------------------------------------------------------------------------
# Pure-JAX reference (lax.conv, NCHW/OIHW like PyTorch) for validation.
# ----------------------------------------------------------------------------------
def convgru_ref(x_nchw, params, hidden=None):
    n_layers = len(params)
    if not hidden:
        hidden = [None] * n_layers

    def conv(inp, w, b):
        out = jax.lax.conv_general_dilated(
            inp, w, window_strides=(1, 1), padding="SAME",
            dimension_numbers=("NCHW", "OIHW", "NCHW"))
        return out + b.reshape(1, -1, 1, 1)

    input_ = x_nchw
    outs = []
    for i, prm in enumerate(params):
        ch = prm["hidden_size"]
        B, _, H, W = input_.shape
        h = hidden[i]
        if h is None:
            h = jnp.zeros((B, ch, H, W), jnp.float32)
        stacked = jnp.concatenate([input_, h], axis=1)
        update = jax.nn.sigmoid(conv(stacked, prm["w_u"], prm["b_u"]))
        reset = jax.nn.sigmoid(conv(stacked, prm["w_r"], prm["b_r"]))
        stacked2 = jnp.concatenate([input_, h * reset], axis=1)
        out_inputs = jnp.tanh(conv(stacked2, prm["w_o"], prm["b_o"]))
        new_h = h * (1.0 - update) + out_inputs * update
        outs.append(new_h)
        input_ = new_h
    return outs


if __name__ == "__main__":
    key = jax.random.PRNGKey(0)

    # Small, module-consistent shapes: batch=2, in-channels=4, 16x16 spatial,
    # hidden=8, kernel=3, 2 layers.
    B, Cin, Hsp, Wsp = 2, 4, 16, 16
    hidden_sizes, kernel_sizes, n_layers = 8, 3, 2

    params = init_convgru_params(jax.random.fold_in(key, 1),
                                 Cin, hidden_sizes, kernel_sizes, n_layers)
    # The module inits biases to zero; use small non-zero biases here so the fused
    # bias path is actually exercised by the validation.
    for i, prm in enumerate(params):
        ch = prm["hidden_size"]
        kb = jax.random.split(jax.random.fold_in(key, 100 + i), 3)
        prm["b_u"] = 0.1 * jax.random.normal(kb[0], (ch,), jnp.float32)
        prm["b_r"] = 0.1 * jax.random.normal(kb[1], (ch,), jnp.float32)
        prm["b_o"] = 0.1 * jax.random.normal(kb[2], (ch,), jnp.float32)

    x = jax.random.normal(jax.random.fold_in(key, 2), (B, Cin, Hsp, Wsp), jnp.float32)

    # Case 1: hidden=None (module default: zero initial state).
    out1 = [jax.block_until_ready(h) for h in convgru_forward(x, params)]
    ref1 = convgru_ref(x, params)

    # Case 2: random initial hidden states (exercises the h / reset / out-gate path).
    hidden = [jax.random.normal(jax.random.fold_in(key, 200 + i),
                                (B, params[i]["hidden_size"], Hsp, Wsp), jnp.float32)
              for i in range(n_layers)]
    out2 = [jax.block_until_ready(h) for h in convgru_forward(x, params, hidden)]
    ref2 = convgru_ref(x, params, hidden)

    for got, want in zip(out1 + out2, ref1 + ref2):
        assert got.shape == want.shape
        assert jnp.allclose(got, want, atol=1e-3, rtol=1e-3), "mismatch vs reference"

    print("KERNEL_OK")
</pallas_src>

<mosaic_0001>
module attributes {stable_mosaic.version = 11 : i64} {
  func.func @_convgru_cell_kernel(%arg0: i32, %arg1: memref<1x8x256xf32, #tpu.memory_space<vmem>>, %arg2: memref<1x8x256xf32, #tpu.memory_space<vmem>>, %arg3: memref<24x72xf32, #tpu.memory_space<vmem>>, %arg4: memref<16x72xf32, #tpu.memory_space<vmem>>, %arg5: memref<8x72xf32, #tpu.memory_space<vmem>>, %arg6: memref<24x1xf32, #tpu.memory_space<vmem>>, %arg7: memref<9x256xf32, #tpu.memory_space<vmem>>, %arg8: memref<1x8x256xf32, #tpu.memory_space<vmem>>) attributes {dimension_semantics = [#tpu.dimension_semantics<parallel>], iteration_bounds = array<i64: 2>, scalar_prefetch = 0 : i64, scratch_operands = 0 : i64, tpu.core_type = #tpu.core_type<tc>, window_params = [{transform_indices = @transform_0, window_bounds = array<i64: 1, 8, 256>}, {transform_indices = @transform_1, window_bounds = array<i64: 1, 8, 256>}, {pipeline_mode = #tpu.pipeline_mode<synchronous>, transform_indices = @transform_2, window_bounds = array<i64: 24, 72>}, {pipeline_mode = #tpu.pipeline_mode<synchronous>, transform_indices = @transform_3, window_bounds = array<i64: 16, 72>}, {pipeline_mode = #tpu.pipeline_mode<synchronous>, transform_indices = @transform_4, window_bounds = array<i64: 8, 72>}, {pipeline_mode = #tpu.pipeline_mode<synchronous>, transform_indices = @transform_5, window_bounds = array<i64: 24, 1>}, {pipeline_mode = #tpu.pipeline_mode<synchronous>, transform_indices = @transform_6, window_bounds = array<i64: 9, 256>}, {transform_indices = @transform_7, window_bounds = array<i64: 1, 8, 256>}]} {
    %c0 = arith.constant 0 : index
    %c0_0 = arith.constant 0 : index
    %c0_1 = arith.constant 0 : index
    %0 = vector.load %arg1[%c0, %c0_0, %c0_1] : memref<1x8x256xf32, #tpu.memory_space<vmem>>, vector<1x8x256xf32>
    %1 = vector.shape_cast %0 : vector<1x8x256xf32> to vector<8x256xf32>
    %c0_2 = arith.constant 0 : index
    %c0_3 = arith.constant 0 : index
    %c0_4 = arith.constant 0 : index
    %2 = vector.load %arg2[%c0_2, %c0_3, %c0_4] : memref<1x8x256xf32, #tpu.memory_space<vmem>>, vector<1x8x256xf32>
    %3 = vector.shape_cast %2 : vector<1x8x256xf32> to vector<8x256xf32>
    %c0_5 = arith.constant 0 : index
    %c0_6 = arith.constant 0 : index
    %4 = vector.load %arg7[%c0_5, %c0_6] : memref<9x256xf32, #tpu.memory_space<vmem>>, vector<9x256xf32>
    %5 = vector.extract_strided_slice %1 {offsets = [0, 239], sizes = [8, 17], strides = [1, 1]} : vector<8x256xf32> to vector<8x17xf32>
    %6 = vector.extract_strided_slice %1 {offsets = [0, 0], sizes = [8, 239], strides = [1, 1]} : vector<8x256xf32> to vector<8x239xf32>
    %7 = tpu.concatenate %5, %6 in 1 : vector<8x17xf32>, vector<8x239xf32> -> vector<8x256xf32>
    %8 = vector.extract_strided_slice %4 {offsets = [0, 0], sizes = [1, 256], strides = [1, 1]} : vector<9x256xf32> to vector<1x256xf32>
    %9 = vector.broadcast %8 : vector<1x256xf32> to vector<8x256xf32>
    %10 = arith.mulf %7, %9 : vector<8x256xf32>
    %11 = vector.extract_strided_slice %1 {offsets = [0, 240], sizes = [8, 16], strides = [1, 1]} : vector<8x256xf32> to vector<8x16xf32>
    %12 = vector.extract_strided_slice %1 {offsets = [0, 0], sizes = [8, 240], strides = [1, 1]} : vector<8x256xf32> to vector<8x240xf32>
    %13 = tpu.concatenate %11, %12 in 1 : vector<8x16xf32>, vector<8x240xf32> -> vector<8x256xf32>
    %14 = vector.extract_strided_slice %4 {offsets = [1, 0], sizes = [1, 256], strides = [1, 1]} : vector<9x256xf32> to vector<1x256xf32>
    %15 = vector.broadcast %14 : vector<1x256xf32> to vector<8x256xf32>
    %16 = arith.mulf %13, %15 : vector<8x256xf32>
    %17 = vector.extract_strided_slice %1 {offsets = [0, 241], sizes = [8, 15], strides = [1, 1]} : vector<8x256xf32> to vector<8x15xf32>
    %18 = vector.extract_strided_slice %1 {offsets = [0, 0], sizes = [8, 241], strides = [1, 1]} : vector<8x256xf32> to vector<8x241xf32>
    %19 = tpu.concatenate %17, %18 in 1 : vector<8x15xf32>, vector<8x241xf32> -> vector<8x256xf32>
    %20 = vector.extract_strided_slice %4 {offsets = [2, 0], sizes = [1, 256], strides = [1, 1]} : vector<9x256xf32> to vector<1x256xf32>
    %21 = vector.broadcast %20 : vector<1x256xf32> to vector<8x256xf32>
    %22 = arith.mulf %19, %21 : vector<8x256xf32>
    %23 = vector.extract_strided_slice %1 {offsets = [0, 255], sizes = [8, 1], strides = [1, 1]} : vector<8x256xf32> to vector<8x1xf32>
    %24 = vector.extract_strided_slice %1 {offsets = [0, 0], sizes = [8, 255], strides = [1, 1]} : vector<8x256xf32> to vector<8x255xf32>
    %25 = tpu.concatenate %23, %24 in 1 : vector<8x1xf32>, vector<8x255xf32> -> vector<8x256xf32>
    %26 = vector.extract_strided_slice %4 {offsets = [3, 0], sizes = [1, 256], strides = [1, 1]} : vector<9x256xf32> to vector<1x256xf32>
    %27 = vector.broadcast %26 : vector<1x256xf32> to vector<8x256xf32>
    %28 = arith.mulf %25, %27 : vector<8x256xf32>
    %29 = vector.extract_strided_slice %1 {offsets = [0, 1], sizes = [8, 255], strides = [1, 1]} : vector<8x256xf32> to vector<8x255xf32>
    %30 = vector.extract_strided_slice %1 {offsets = [0, 0], sizes = [8, 1], strides = [1, 1]} : vector<8x256xf32> to vector<8x1xf32>
    %31 = tpu.concatenate %29, %30 in 1 : vector<8x255xf32>, vector<8x1xf32> -> vector<8x256xf32>
    %32 = vector.extract_strided_slice %4 {offsets = [5, 0], sizes = [1, 256], strides = [1, 1]} : vector<9x256xf32> to vector<1x256xf32>
    %33 = vector.broadcast %32 : vector<1x256xf32> to vector<8x256xf32>
    %34 = arith.mulf %31, %33 : vector<8x256xf32>
    %35 = vector.extract_strided_slice %1 {offsets = [0, 15], sizes = [8, 241], strides = [1, 1]} : vector<8x256xf32> to vector<8x241xf32>
    %36 = vector.extract_strided_slice %1 {offsets = [0, 0], sizes = [8, 15], strides = [1, 1]} : vector<8x256xf32> to vector<8x15xf32>
    %37 = tpu.concatenate %35, %36 in 1 : vector<8x241xf32>, vector<8x15xf32> -> vector<8x256xf32>
    %38 = vector.extract_strided_slice %4 {offsets = [6, 0], sizes = [1, 256], strides = [1, 1]} : vector<9x256xf32> to vector<1x256xf32>
    %39 = vector.broadcast %38 : vector<1x256xf32> to vector<8x256xf32>
    %40 = arith.mulf %37, %39 : vector<8x256xf32>
    %41 = vector.extract_strided_slice %1 {offsets = [0, 16], sizes = [8, 240], strides = [1, 1]} : vector<8x256xf32> to vector<8x240xf32>
    %42 = vector.extract_strided_slice %1 {offsets = [0, 0], sizes = [8, 16], strides = [1, 1]} : vector<8x256xf32> to vector<8x16xf32>
    %43 = tpu.concatenate %41, %42 in 1 : vector<8x240xf32>, vector<8x16xf32> -> vector<8x256xf32>
    %44 = vector.extract_strided_slice %4 {offsets = [7, 0], sizes = [1, 256], strides = [1, 1]} : vector<9x256xf32> to vector<1x256xf32>
    %45 = vector.broadcast %44 : vector<1x256xf32> to vector<8x256xf32>
    %46 = arith.mulf %43, %45 : vector<8x256xf32>
    %47 = vector.extract_strided_slice %1 {offsets = [0, 17], sizes = [8, 239], strides = [1, 1]} : vector<8x256xf32> to vector<8x239xf32>
    %48 = vector.extract_strided_slice %1 {offsets = [0, 0], sizes = [8, 17], strides = [1, 1]} : vector<8x256xf32> to vector<8x17xf32>
    %49 = tpu.concatenate %47, %48 in 1 : vector<8x239xf32>, vector<8x17xf32> -> vector<8x256xf32>
    %50 = vector.extract_strided_slice %4 {offsets = [8, 0], sizes = [1, 256], strides = [1, 1]} : vector<9x256xf32> to vector<1x256xf32>
    %51 = vector.broadcast %50 : vector<1x256xf32> to vector<8x256xf32>
    %52 = arith.mulf %49, %51 : vector<8x256xf32>
    %53 = tpu.concatenate %10, %16, %22, %28, %1, %34, %40, %46, %52 in 0 : vector<8x256xf32>, vector<8x256xf32>, vector<8x256xf32>, vector<8x256xf32>, vector<8x256xf32>, vector<8x256xf32>, vector<8x256xf32>, vector<8x256xf32>, vector<8x256xf32> -> vector<72x256xf32>
    %c0_7 = arith.constant 0 : index
    %c0_8 = arith.constant 0 : index
    %54 = vector.load %arg3[%c0_7, %c0_8] : memref<24x72xf32, #tpu.memory_space<vmem>>, vector<24x72xf32>
    %cst = arith.constant dense<0.000000e+00> : vector<24x256xf32>
    %55 = tpu.matmul %54, %53, %cst {dimension_numbers = #tpu.dot_dimension_numbers<[1], [0], [0], [1], [0, 0, 1, 1], [], []>} : vector<24x72xf32>, vector<72x256xf32>, vector<24x256xf32> -> vector<24x256xf32>
    %c0_9 = arith.constant 0 : index
    %c0_10 = arith.constant 0 : index
    %56 = vector.load %arg6[%c0_9, %c0_10] : memref<24x1xf32, #tpu.memory_space<vmem>>, vector<24x1xf32>
    %57 = vector.broadcast %56 : vector<24x1xf32> to vector<24x256xf32>
    %58 = arith.addf %55, %57 : vector<24x256xf32>
    %59 = vector.extract_strided_slice %3 {offsets = [0, 239], sizes = [8, 17], strides = [1, 1]} : vector<8x256xf32> to vector<8x17xf32>
    %60 = vector.extract_strided_slice %3 {offsets = [0, 0], sizes = [8, 239], strides = [1, 1]} : vector<8x256xf32> to vector<8x239xf32>
    %61 = tpu.concatenate %59, %60 in 1 : vector<8x17xf32>, vector<8x239xf32> -> vector<8x256xf32>
    %62 = vector.extract_strided_slice %4 {offsets = [0, 0], sizes = [1, 256], strides = [1, 1]} : vector<9x256xf32> to vector<1x256xf32>
    %63 = vector.broadcast %62 : vector<1x256xf32> to vector<8x256xf32>
    %64 = arith.mulf %61, %63 : vector<8x256xf32>
    %65 = vector.extract_strided_slice %3 {offsets = [0, 240], sizes = [8, 16], strides = [1, 1]} : vector<8x256xf32> to vector<8x16xf32>
    %66 = vector.extract_strided_slice %3 {offsets = [0, 0], sizes = [8, 240], strides = [1, 1]} : vector<8x256xf32> to vector<8x240xf32>
    %67 = tpu.concatenate %65, %66 in 1 : vector<8x16xf32>, vector<8x240xf32> -> vector<8x256xf32>
    %68 = vector.extract_strided_slice %4 {offsets = [1, 0], sizes = [1, 256], strides = [1, 1]} : vector<9x256xf32> to vector<1x256xf32>
    %69 = vector.broadcast %68 : vector<1x256xf32> to vector<8x256xf32>
    %70 = arith.mulf %67, %69 : vector<8x256xf32>
    %71 = vector.extract_strided_slice %3 {offsets = [0, 241], sizes = [8, 15], strides = [1, 1]} : vector<8x256xf32> to vector<8x15xf32>
    %72 = vector.extract_strided_slice %3 {offsets = [0, 0], sizes = [8, 241], strides = [1, 1]} : vector<8x256xf32> to vector<8x241xf32>
    %73 = tpu.concatenate %71, %72 in 1 : vector<8x15xf32>, vector<8x241xf32> -> vector<8x256xf32>
    %74 = vector.extract_strided_slice %4 {offsets = [2, 0], sizes = [1, 256], strides = [1, 1]} : vector<9x256xf32> to vector<1x256xf32>
    %75 = vector.broadcast %74 : vector<1x256xf32> to vector<8x256xf32>
    %76 = arith.mulf %73, %75 : vector<8x256xf32>
    %77 = vector.extract_strided_slice %3 {offsets = [0, 255], sizes = [8, 1], strides = [1, 1]} : vector<8x256xf32> to vector<8x1xf32>
    %78 = vector.extract_strided_slice %3 {offsets = [0, 0], sizes = [8, 255], strides = [1, 1]} : vector<8x256xf32> to vector<8x255xf32>
    %79 = tpu.concatenate %77, %78 in 1 : vector<8x1xf32>, vector<8x255xf32> -> vector<8x256xf32>
    %80 = vector.extract_strided_slice %4 {offsets = [3, 0], sizes = [1, 256], strides = [1, 1]} : vector<9x256xf32> to vector<1x256xf32>
    %81 = vector.broadcast %80 : vector<1x256xf32> to vector<8x256xf32>
    %82 = arith.mulf %79, %81 : vector<8x256xf32>
    %83 = vector.extract_strided_slice %3 {offsets = [0, 1], sizes = [8, 255], strides = [1, 1]} : vector<8x256xf32> to vector<8x255xf32>
    %84 = vector.extract_strided_slice %3 {offsets = [0, 0], sizes = [8, 1], strides = [1, 1]} : vector<8x256xf32> to vector<8x1xf32>
    %85 = tpu.concatenate %83, %84 in 1 : vector<8x255xf32>, vector<8x1xf32> -> vector<8x256xf32>
    %86 = vector.extract_strided_slice %4 {offsets = [5, 0], sizes = [1, 256], strides = [1, 1]} : vector<9x256xf32> to vector<1x256xf32>
    %87 = vector.broadcast %86 : vector<1x256xf32> to vector<8x256xf32>
    %88 = arith.mulf %85, %87 : vector<8x256xf32>
    %89 = vector.extract_strided_slice %3 {offsets = [0, 15], sizes = [8, 241], strides = [1, 1]} : vector<8x256xf32> to vector<8x241xf32>
    %90 = vector.extract_strided_slice %3 {offsets = [0, 0], sizes = [8, 15], strides = [1, 1]} : vector<8x256xf32> to vector<8x15xf32>
    %91 = tpu.concatenate %89, %90 in 1 : vector<8x241xf32>, vector<8x15xf32> -> vector<8x256xf32>
    %92 = vector.extract_strided_slice %4 {offsets = [6, 0], sizes = [1, 256], strides = [1, 1]} : vector<9x256xf32> to vector<1x256xf32>
    %93 = vector.broadcast %92 : vector<1x256xf32> to vector<8x256xf32>
    %94 = arith.mulf %91, %93 : vector<8x256xf32>
    %95 = vector.extract_strided_slice %3 {offsets = [0, 16], sizes = [8, 240], strides = [1, 1]} : vector<8x256xf32> to vector<8x240xf32>
    %96 = vector.extract_strided_slice %3 {offsets = [0, 0], sizes = [8, 16], strides = [1, 1]} : vector<8x256xf32> to vector<8x16xf32>
    %97 = tpu.concatenate %95, %96 in 1 : vector<8x240xf32>, vector<8x16xf32> -> vector<8x256xf32>
    %98 = vector.extract_strided_slice %4 {offsets = [7, 0], sizes = [1, 256], strides = [1, 1]} : vector<9x256xf32> to vector<1x256xf32>
    %99 = vector.broadcast %98 : vector<1x256xf32> to vector<8x256xf32>
    %100 = arith.mulf %97, %99 : vector<8x256xf32>
    %101 = vector.extract_strided_slice %3 {offsets = [0, 17], sizes = [8, 239], strides = [1, 1]} : vector<8x256xf32> to vector<8x239xf32>
    %102 = vector.extract_strided_slice %3 {offsets = [0, 0], sizes = [8, 17], strides = [1, 1]} : vector<8x256xf32> to vector<8x17xf32>
    %103 = tpu.concatenate %101, %102 in 1 : vector<8x239xf32>, vector<8x17xf32> -> vector<8x256xf32>
    %104 = vector.extract_strided_slice %4 {offsets = [8, 0], sizes = [1, 256], strides = [1, 1]} : vector<9x256xf32> to vector<1x256xf32>
    %105 = vector.broadcast %104 : vector<1x256xf32> to vector<8x256xf32>
    %106 = arith.mulf %103, %105 : vector<8x256xf32>
    %107 = tpu.concatenate %64, %70, %76, %82, %3, %88, %94, %100, %106 in 0 : vector<8x256xf32>, vector<8x256xf32>, vector<8x256xf32>, vector<8x256xf32>, vector<8x256xf32>, vector<8x256xf32>, vector<8x256xf32>, vector<8x256xf32>, vector<8x256xf32> -> vector<72x256xf32>
    %c0_11 = arith.constant 0 : index
    %c0_12 = arith.constant 0 : index
    %108 = vector.load %arg4[%c0_11, %c0_12] : memref<16x72xf32, #tpu.memory_space<vmem>>, vector<16x72xf32>
    %cst_13 = arith.constant dense<0.000000e+00> : vector<16x256xf32>
    %109 = tpu.matmul %108, %107, %cst_13 {dimension_numbers = #tpu.dot_dimension_numbers<[1], [0], [0], [1], [0, 0, 1, 1], [], []>} : vector<16x72xf32>, vector<72x256xf32>, vector<16x256xf32> -> vector<16x256xf32>
    %110 = vector.extract_strided_slice %58 {offsets = [0, 0], sizes = [8, 256], strides = [1, 1]} : vector<24x256xf32> to vector<8x256xf32>
    %111 = vector.extract_strided_slice %109 {offsets = [0, 0], sizes = [8, 256], strides = [1, 1]} : vector<16x256xf32> to vector<8x256xf32>
    %112 = arith.addf %110, %111 : vector<8x256xf32>
    %113 = arith.negf %112 : vector<8x256xf32>
    %114 = math.exp %113 : vector<8x256xf32>
    %cst_14 = arith.constant 1.000000e+00 : f32
    %115 = vector.broadcast %cst_14 : f32 to vector<8x256xf32>
    %116 = arith.addf %115, %114 : vector<8x256xf32>
    %117 = arith.divf %115, %116 : vector<8x256xf32>
    %118 = vector.extract_strided_slice %58 {offsets = [8, 0], sizes = [8, 256], strides = [1, 1]} : vector<24x256xf32> to vector<8x256xf32>
    %119 = vector.extract_strided_slice %109 {offsets = [8, 0], sizes = [8, 256], strides = [1, 1]} : vector<16x256xf32> to vector<8x256xf32>
    %120 = arith.addf %118, %119 : vector<8x256xf32>
    %121 = arith.negf %120 : vector<8x256xf32>
    %122 = math.exp %121 : vector<8x256xf32>
    %cst_15 = arith.constant 1.000000e+00 : f32
    %123 = vector.broadcast %cst_15 : f32 to vector<8x256xf32>
    %124 = arith.addf %123, %122 : vector<8x256xf32>
    %125 = arith.divf %123, %124 : vector<8x256xf32>
    %126 = arith.mulf %3, %125 : vector<8x256xf32>
    %127 = vector.extract_strided_slice %126 {offsets = [0, 239], sizes = [8, 17], strides = [1, 1]} : vector<8x256xf32> to vector<8x17xf32>
    %128 = vector.extract_strided_slice %126 {offsets = [0, 0], sizes = [8, 239], strides = [1, 1]} : vector<8x256xf32> to vector<8x239xf32>
    %129 = tpu.concatenate %127, %128 in 1 : vector<8x17xf32>, vector<8x239xf32> -> vector<8x256xf32>
    %130 = vector.extract_strided_slice %4 {offsets = [0, 0], sizes = [1, 256], strides = [1, 1]} : vector<9x256xf32> to vector<1x256xf32>
    %131 = vector.broadcast %130 : vector<1x256xf32> to vector<8x256xf32>
    %132 = arith.mulf %129, %131 : vector<8x256xf32>
    %133 = vector.extract_strided_slice %126 {offsets = [0, 240], sizes = [8, 16], strides = [1, 1]} : vector<8x256xf32> to vector<8x16xf32>
    %134 = vector.extract_strided_slice %126 {offsets = [0, 0], sizes = [8, 240], strides = [1, 1]} : vector<8x256xf32> to vector<8x240xf32>
    %135 = tpu.concatenate %133, %134 in 1 : vector<8x16xf32>, vector<8x240xf32> -> vector<8x256xf32>
    %136 = vector.extract_strided_slice %4 {offsets = [1, 0], sizes = [1, 256], strides = [1, 1]} : vector<9x256xf32> to vector<1x256xf32>
    %137 = vector.broadcast %136 : vector<1x256xf32> to vector<8x256xf32>
    %138 = arith.mulf %135, %137 : vector<8x256xf32>
    %139 = vector.extract_strided_slice %126 {offsets = [0, 241], sizes = [8, 15], strides = [1, 1]} : vector<8x256xf32> to vector<8x15xf32>
    %140 = vector.extract_strided_slice %126 {offsets = [0, 0], sizes = [8, 241], strides = [1, 1]} : vector<8x256xf32> to vector<8x241xf32>
    %141 = tpu.concatenate %139, %140 in 1 : vector<8x15xf32>, vector<8x241xf32> -> vector<8x256xf32>
    %142 = vector.extract_strided_slice %4 {offsets = [2, 0], sizes = [1, 256], strides = [1, 1]} : vector<9x256xf32> to vector<1x256xf32>
    %143 = vector.broadcast %142 : vector<1x256xf32> to vector<8x256xf32>
    %144 = arith.mulf %141, %143 : vector<8x256xf32>
    %145 = vector.extract_strided_slice %126 {offsets = [0, 255], sizes = [8, 1], strides = [1, 1]} : vector<8x256xf32> to vector<8x1xf32>
    %146 = vector.extract_strided_slice %126 {offsets = [0, 0], sizes = [8, 255], strides = [1, 1]} : vector<8x256xf32> to vector<8x255xf32>
    %147 = tpu.concatenate %145, %146 in 1 : vector<8x1xf32>, vector<8x255xf32> -> vector<8x256xf32>
    %148 = vector.extract_strided_slice %4 {offsets = [3, 0], sizes = [1, 256], strides = [1, 1]} : vector<9x256xf32> to vector<1x256xf32>
    %149 = vector.broadcast %148 : vector<1x256xf32> to vector<8x256xf32>
    %150 = arith.mulf %147, %149 : vector<8x256xf32>
    %151 = vector.extract_strided_slice %126 {offsets = [0, 1], sizes = [8, 255], strides = [1, 1]} : vector<8x256xf32> to vector<8x255xf32>
    %152 = vector.extract_strided_slice %126 {offsets = [0, 0], sizes = [8, 1], strides = [1, 1]} : vector<8x256xf32> to vector<8x1xf32>
    %153 = tpu.concatenate %151, %152 in 1 : vector<8x255xf32>, vector<8x1xf32> -> vector<8x256xf32>
    %154 = vector.extract_strided_slice %4 {offsets = [5, 0], sizes = [1, 256], strides = [1, 1]} : vector<9x256xf32> to vector<1x256xf32>
    %155 = vector.broadcast %154 : vector<1x256xf32> to vector<8x256xf32>
    %156 = arith.mulf %153, %155 : vector<8x256xf32>
    %157 = vector.extract_strided_slice %126 {offsets = [0, 15], sizes = [8, 241], strides = [1, 1]} : vector<8x256xf32> to vector<8x241xf32>
    %158 = vector.extract_strided_slice %126 {offsets = [0, 0], sizes = [8, 15], strides = [1, 1]} : vector<8x256xf32> to vector<8x15xf32>
    %159 = tpu.concatenate %157, %158 in 1 : vector<8x241xf32>, vector<8x15xf32> -> vector<8x256xf32>
    %160 = vector.extract_strided_slice %4 {offsets = [6, 0], sizes = [1, 256], strides = [1, 1]} : vector<9x256xf32> to vector<1x256xf32>
    %161 = vector.broadcast %160 : vector<1x256xf32> to vector<8x256xf32>
    %162 = arith.mulf %159, %161 : vector<8x256xf32>
    %163 = vector.extract_strided_slice %126 {offsets = [0, 16], sizes = [8, 240], strides = [1, 1]} : vector<8x256xf32> to vector<8x240xf32>
    %164 = vector.extract_strided_slice %126 {offsets = [0, 0], sizes = [8, 16], strides = [1, 1]} : vector<8x256xf32> to vector<8x16xf32>
    %165 = tpu.concatenate %163, %164 in 1 : vector<8x240xf32>, vector<8x16xf32> -> vector<8x256xf32>
    %166 = vector.extract_strided_slice %4 {offsets = [7, 0], sizes = [1, 256], strides = [1, 1]} : vector<9x256xf32> to vector<1x256xf32>
    %167 = vector.broadcast %166 : vector<1x256xf32> to vector<8x256xf32>
    %168 = arith.mulf %165, %167 : vector<8x256xf32>
    %169 = vector.extract_strided_slice %126 {offsets = [0, 17], sizes = [8, 239], strides = [1, 1]} : vector<8x256xf32> to vector<8x239xf32>
    %170 = vector.extract_strided_slice %126 {offsets = [0, 0], sizes = [8, 17], strides = [1, 1]} : vector<8x256xf32> to vector<8x17xf32>
    %171 = tpu.concatenate %169, %170 in 1 : vector<8x239xf32>, vector<8x17xf32> -> vector<8x256xf32>
    %172 = vector.extract_strided_slice %4 {offsets = [8, 0], sizes = [1, 256], strides = [1, 1]} : vector<9x256xf32> to vector<1x256xf32>
    %173 = vector.broadcast %172 : vector<1x256xf32> to vector<8x256xf32>
    %174 = arith.mulf %171, %173 : vector<8x256xf32>
    %175 = tpu.concatenate %132, %138, %144, %150, %126, %156, %162, %168, %174 in 0 : vector<8x256xf32>, vector<8x256xf32>, vector<8x256xf32>, vector<8x256xf32>, vector<8x256xf32>, vector<8x256xf32>, vector<8x256xf32>, vector<8x256xf32>, vector<8x256xf32> -> vector<72x256xf32>
    %c0_16 = arith.constant 0 : index
    %c0_17 = arith.constant 0 : index
    %176 = vector.load %arg5[%c0_16, %c0_17] : memref<8x72xf32, #tpu.memory_space<vmem>>, vector<8x72xf32>
    %cst_18 = arith.constant dense<0.000000e+00> : vector<8x256xf32>
    %177 = tpu.matmul %176, %175, %cst_18 {dimension_numbers = #tpu.dot_dimension_numbers<[1], [0], [0], [1], [0, 0, 1, 1], [], []>} : vector<8x72xf32>, vector<72x256xf32>, vector<8x256xf32> -> vector<8x256xf32>
    %178 = vector.extract_strided_slice %58 {offsets = [16, 0], sizes = [8, 256], strides = [1, 1]} : vector<24x256xf32> to vector<8x256xf32>
    %179 = arith.addf %178, %177 : vector<8x256xf32>
    %180 = math.tanh %179 : vector<8x256xf32>
    %cst_19 = arith.constant 1.000000e+00 : f32
    %181 = vector.broadcast %cst_19 : f32 to vector<8x256xf32>
    %182 = arith.subf %181, %117 : vector<8x256xf32>
    %183 = arith.mulf %3, %182 : vector<8x256xf32>
    %184 = arith.mulf %180, %117 : vector<8x256xf32>
    %185 = arith.addf %183, %184 : vector<8x256xf32>
    %c0_20 = arith.constant 0 : index
    %c0_21 = arith.constant 0 : index
    %c0_22 = arith.constant 0 : index
    %186 = vector.load %arg8[%c0_20, %c0_21, %c0_22] : memref<1x8x256xf32, #tpu.memory_space<vmem>>, vector<1x8x256xf32>
    %187 = vector.shape_cast %186 : vector<1x8x256xf32> to vector<8x256xf32>
    %188 = vector.shape_cast %185 : vector<8x256xf32> to vector<1x8x256xf32>
    tpu.vector_store %arg8[%c0_20, %c0_21, %c0_22], %188 {strides = array<i32>} : memref<1x8x256xf32, #tpu.memory_space<vmem>>, vector<1x8x256xf32>,
    return
  }
  func.func @transform_0(%arg0: i32) -> (i32, i32, i32) {
    %c0_i32 = arith.constant 0 : i32
    %c0_i32_0 = arith.constant 0 : i32
    %c0_i32_1 = arith.constant 0 : i32
    return %arg0, %c0_i32, %c0_i32_0 : i32, i32, i32
  }
  func.func @transform_1(%arg0: i32) -> (i32, i32, i32) {
    %c0_i32 = arith.constant 0 : i32
    %c0_i32_0 = arith.constant 0 : i32
    %c0_i32_1 = arith.constant 0 : i32
    return %arg0, %c0_i32, %c0_i32_0 : i32, i32, i32
  }
  func.func @transform_2(%arg0: i32) -> (i32, i32) {
    %c0_i32 = arith.constant 0 : i32
    %c0_i32_0 = arith.constant 0 : i32
    %c0_i32_1 = arith.constant 0 : i32
    return %c0_i32, %c0_i32_0 : i32, i32
  }
  func.func @transform_3(%arg0: i32) -> (i32, i32) {
    %c0_i32 = arith.constant 0 : i32
    %c0_i32_0 = arith.constant 0 : i32
    %c0_i32_1 = arith.constant 0 : i32
    return %c0_i32, %c0_i32_0 : i32, i32
  }
  func.func @transform_4(%arg0: i32) -> (i32, i32) {
    %c0_i32 = arith.constant 0 : i32
    %c0_i32_0 = arith.constant 0 : i32
    %c0_i32_1 = arith.constant 0 : i32
    return %c0_i32, %c0_i32_0 : i32, i32
  }
  func.func @transform_5(%arg0: i32) -> (i32, i32) {
    %c0_i32 = arith.constant 0 : i32
    %c0_i32_0 = arith.constant 0 : i32
    %c0_i32_1 = arith.constant 0 : i32
    return %c0_i32, %c0_i32_0 : i32, i32
  }
  func.func @transform_6(%arg0: i32) -> (i32, i32) {
    %c0_i32 = arith.constant 0 : i32
    %c0_i32_0 = arith.constant 0 : i32
    %c0_i32_1 = arith.constant 0 : i32
    return %c0_i32, %c0_i32_0 : i32, i32
  }
  func.func @transform_7(%arg0: i32) -> (i32, i32, i32) {
    %c0_i32 = arith.constant 0 : i32
    %c0_i32_0 = arith.constant 0 : i32
    %c0_i32_1 = arith.constant 0 : i32
    return %arg0, %c0_i32, %c0_i32_0 : i32, i32, i32
  }
}

</mosaic_0001>

<bundles_post_ra>
// kernel: tpu_custom_call.1
= control target key start
LH: loop header
LB: loop body
LE: loop exit
PB: predicated region body
PF: predicated region fallthrough
CT: control target
= control target key end

     0   :  { %s2208_s0 = inlined_call_operand.hbm [shape: f32[2,8,256], index: 0, kind: input, shape index: {}]   ;;  %s2209_s1 = inlined_call_operand.hbm [shape: f32[2,8,256], index: 1, kind: input, shape index: {}]   ;;  %s2210_s2 = inlined_call_operand.hbm [shape: f32[24,72], index: 2, kind: input, shape index: {}]   ;;  %s2211_s3 = inlined_call_operand.hbm [shape: f32[16,72], index: 3, kind: input, shape index: {}]   ;;  %s2212_s4 = inlined_call_operand.vmem [shape: f32[8,72], index: 4, kind: input, shape index: {}]   ;;  %s2213_s5 = inlined_call_operand.vmem [shape: f32[24,1], index: 5, kind: input, shape index: {}]   ;;  %s2214_s6 = inlined_call_operand.vmem [shape: f32[9,256], index: 6, kind: input, shape index: {}]   ;;  %s2215_s7 = inlined_call_operand.hbm [shape: f32[2,8,256], index: 7, kind: output, shape index: {}]  }
   0x1   :  { %2221 = sst [smem:[#allocation18_spill]] %s2210_s2 }
   0x2   :  { %2222 = sst [smem:[#allocation19_spill]] %s2211_s3 }
   0x3   :  { %12 = vsyncpa [#allocation3], 0 }
   0x4   :  { %14 = vsyncpa [#allocation3 + $0x1], 0 }
   0x5   :  { %15 = vsyncpa [#allocation6], 0 }
   0x6   :  { %17 = vsyncpa [#allocation6 + $0x1], 0 }
   0x7   :  { %18 = vsyncpa [#allocation9], 0 }
   0x8   :  { %19 = vsyncpa [#allocation4], 0 }
   0x9   :  { %21 = vsyncpa [#allocation4 + $0x1], 0  ;;  %s1613_s24 = smov 0   ;;  %s1615_s25 = smov 0  }
   0xa   :  { %s1617_s26 = smov 0   ;;  %s1619_s27 = smov 0  }
   0xb LB: > { %2223 = sst [smem:[#allocation16_spill]] %s1550_s26  ;;  %s1634_s28 = sadd.s32 4294967295, %s1554_s27   ;;  %s1554_s27 = sphi %s1619_s27, %s2248_s27   ;;  %s1550_s26 = sphi %s1617_s26, %s2247_s26   ;;  %s1546_s25 = sphi %s1615_s25, %s2246_s25   ;;  %s1542_s24 = sphi %s1613_s24, %s2245_s24  }
   0xc   : > { %s1157_s29 = sadd.s32 4294967294, %s1554_s27   ;;  %p47_p0 = scmp.ne.s32.totalorder %s1546_s25, %s1542_s24 }
   0xd   : > { %p2216_p1 = scmp.eq.s32.totalorder %s1634_s28, 0  ;;  %p208_p3 = scmp.eq.s32.totalorder %s1157_s29, 1 }
   0xe   : > { %p1158_p5 = scmp.ge.s32.totalorder %s1554_s27, 1  ;;  %p215_p7 = scmp.lt.s32.totalorder %s1554_s27, 3 }
   0xf   : > { %p1643_p4 = por %p2216_p1, %p47_p0  ;;  %p1648_p6 = por %p208_p3, %p47_p0 }
  0x10   : > { %p1653_p8 = pnand %p1158_p5, %p215_p7  ;;  %s1556_s10 = smov [#allocation7]  }
  0x11   : > { %s2224_s30 = scalar_select %p1643_p4, 1, 0 }
  0x12   : > { %s2225_s8 = scalar_select %p1648_p6, 1, 0 }
  0x13   : > { %s2226_s9 = scalar_select %p1653_p8, 1, 0 }
  0x14   : > { %s227_s11 = sshll.u32 %s1556_s10, 4  ;;  %p1268_p9 = pneg %p1653_p8  ;;  %s1657_s11 = int_to_ptr.vmem [resolvable:$true] %s227_s11 }
  0x15   : > { %s1557_s13 = smov [#allocation8]   ;;  %s2228_s2 = sld [smem:[#allocation18_spill]] }
  0x16   : > { %p1664_p11 = pnand %p1268_p9, %p2216_p1  ;;  %s240_s14 = sshll.u32 %s1557_s13, 4  ;;  %s1668_s14 = int_to_ptr.vmem [resolvable:$true] %s240_s14 }
  0x18   : > { %p1362_p13 = pneg %p1664_p11 }
  0x1b   : > { %s1360_s17 = scalar_lea.hbm %s2228_s2, 384 }
  0x1c   : > { %p1361_p12 = scmp.ne.s32.totalorder %s2228_s2, %s1360_s17  ;;  %p1367_p5 = scmp.lt.u32.totalorder %s1360_s17, %s2228_s2 }
  0x1e   : > { %p1363_p0 = pnand %p1362_p13, %p1361_p12 }
  0x20   : > { %p1364_p3 = pneg %p1363_p0 }
  0x22   : > { %p1369_p7 = pnand %p1367_p5, %p1364_p3 }
  0x24   : > { %1372 = shalt.err (!%p1369_p7)
}
  0x25   : > { %s1373_s22 = scalar_lea.vmem %s1657_s11, 384  ;;  %p1381_p2 = scmp.lt.s32.totalorder %s1657_s11, %s1657_s11 }
  0x26   : > { %p1374_p9 = scmp.ne.s32.totalorder %s1657_s11, %s1373_s22  ;;  %p1382_p12 = scmp.lt.s32.totalorder %s1373_s22, %s1373_s22 }
  0x28   : > { %p1376_p10 = pnand %p1374_p9, %p1362_p13  ;;  %p1383_p0 = por %p1382_p12, %p1381_p2 }
  0x2a   : > { %p1377_p1 = pneg %p1376_p10 }
  0x2c   : > { %p1384_p6 = pnand %p1383_p0, %p1377_p1 }
  0x2e   : > { %1387 = shalt.err (!%p1384_p6)
}
  0x2f   : > { %s1558_s23 = smov 128   ;;  %s1559_s29 = smov 8  }
  0x30   : > { %1271 = dma.hbm_to_vmem [thread:$0]  (!%p1664_p11), %s2228_s2, 384, %s1657_s11, [#allocation6], %s1558_s23, %s1558_s23, %s1559_s29  }
  0x31   : > { %s2229_s3 = sld [smem:[#allocation19_spill]] }
  0x37   : > { %s1388_s17 = scalar_lea.hbm %s2229_s3, 256 }
  0x38   : > { %p1389_p2 = scmp.ne.s32.totalorder %s2229_s3, %s1388_s17  ;;  %p1395_p10 = scmp.lt.u32.totalorder %s1388_s17, %s2229_s3 }
  0x3a   : > { %p1391_p1 = pnand %p1389_p2, %p1362_p13 }
  0x3c   : > { %p1392_p6 = pneg %p1391_p1 }
  0x3e   : > { %p1397_p3 = pnand %p1395_p10, %p1392_p6 }
  0x40   : > { %1400 = shalt.err (!%p1397_p3)
}
  0x41   : > { %s1401_s11 = scalar_lea.vmem %s1668_s14, 256  ;;  %p1409_p12 = scmp.lt.s32.totalorder %s1668_s14, %s1668_s14 }
  0x42   : > { %p1402_p5 = scmp.ne.s32.totalorder %s1668_s14, %s1401_s11  ;;  %p1410_p0 = scmp.lt.s32.totalorder %s1401_s11, %s1401_s11 }
  0x44   : > { %p1404_p7 = pnand %p1402_p5, %p1362_p13  ;;  %p1411_p2 = por %p1410_p0, %p1409_p12 }
  0x46   : > { %p1405_p9 = pneg %p1404_p7 }
  0x48   : > { %p1412_p1 = pnand %p1411_p2, %p1405_p9 }
  0x4a   : > { %1415 = shalt.err (!%p1412_p1)
}
  0x4b   : > { %1274 = dma.hbm_to_vmem [thread:$0]  (!%p1664_p11), %s2229_s3, 256, %s1668_s14, [#allocation9], %s1558_s23, %s1558_s23, %s1559_s29  }
  0x4c   : > { %s1723_s13 = sadd.s32 1, %s1554_s27   ;;  %s34_s12 = sadd.s32 1, %s1550_s26 }
  0x4d   : > { %s31_s15 = ssub.s32 %s1554_s27, %s1723_s13  ;;  %p41_p13 = scmp.ne.s32.totalorder %s1550_s26, %s1546_s25 }
  0x4e   : > { %p32_p6 = scmp.eq.s32.totalorder %s31_s15, 0  ;;  %p42_p10 = scmp.eq.s32.totalorder %s1554_s27, 0 }
  0x4f   : > { %p2230_p3 = scmp.eq.s32.totalorder %s1634_s28, 1  ;;  %p1288_p7 = scmp.lt.s32.totalorder %s1554_s27, 2 }
  0x50   : > { %s1739_s17 = scalar_select %p32_p6, %s1550_s26, %s34_s12  }
  0x51   : > { %p1733_p5 = por %p2230_p3, %p41_p13  ;;  %p43_p9 = por %p42_p10, %p41_p13 }
  0x52   : > { %2232 = sst [smem:[#allocation17_spill]] %s1739_s17  ;;  %s263_s18 = sand.u32 1, %s1550_s26  }
  0x53   : > { %s2231_s16 = scalar_select %p1733_p5, 1, 0 }
  0x54   : > { %s1742_s14 = sshll.u32 %s263_s18, 4  ;;  %s1191_s23 = sshll.u32 %s1554_s27, 8 }
  0x55   : > { %s1748_s20 = scalar_lea.hbm %s2208_s0, %s1191_s23  ;;  %s267_s21 = scalar_lea.vmem [#allocation2], %s1742_s14 }
  0x56   : > { %s275_s11 = sshll.u32 %s267_s21, 4  ;;  %p1753_p11 = pnand %p1288_p7, %p43_p9  ;;  %s1751_s11 = int_to_ptr.vmem [resolvable:$true] %s275_s11 }
  0x57   : > { %s1760_s15 = scalar_lea.hbm %s2209_s1, %s1191_s23  ;;  %s282_s29 = sand.u32 1, %s1554_s27  }
  0x58   : > { %s264_s19 = scalar_lea.sflag [#allocation3], %s263_s18  ;;  %s1416_s2 = scalar_lea.hbm %s1748_s20, 256 }
  0x59   : > { %p1417_p12 = scmp.ne.s32.totalorder %s1748_s20, %s1416_s2  ;;  %p1418_p0 = pneg %p1753_p11 }
  0x5a   : > { %s1421_s17 = scalar_lea.hbm %s2208_s0, 512  ;;  %p1422_p13 = scmp.lt.u32.totalorder %s1748_s20, %s2208_s0 }
  0x5b   : > { %p1419_p2 = pnand %p1418_p0, %p1417_p12  ;;  %p1423_p6 = scmp.lt.u32.totalorder %s1421_s17, %s1416_s2 }
  0x5c   : > { %p1425_p3 = scmp.lt.u32.totalorder %s1416_s2, %s1748_s20 }
  0x5d   : > { %p1420_p1 = pneg %p1419_p2  ;;  %p1424_p10 = por %p1423_p6, %p1422_p13 }
  0x5f   : > { %p1426_p7 = por %p1425_p3, %p1424_p10 }
  0x61   : > { %p1427_p9 = pnand %p1426_p7, %p1420_p1 }
  0x63   : > { %1430 = shalt.err (!%p1427_p9)
}
  0x64   : > { %s1431_s18 = scalar_lea.vmem %s1751_s11, 256  ;;  %s1560_s3 = smov [#allocation2]  }
  0x65   : > { %p1432_p12 = scmp.ne.s32.totalorder %s1751_s11, %s1431_s18  ;;  %s1436_s23 = sshll.u32 %s1560_s3, 4  ;;  %s1437_s23 = int_to_ptr.vmem [resolvable:$false] %s1436_s23 }
  0x66   : > { %s1438_s26 = scalar_lea.vmem %s1437_s23, 512  ;;  %p1439_p4 = scmp.lt.s32.totalorder %s1751_s11, %s1437_s23 }
  0x67   : > { %p1434_p2 = pnand %p1432_p12, %p1418_p0  ;;  %p1440_p13 = scmp.lt.s32.totalorder %s1438_s26, %s1431_s18 }
  0x69   : > { %p1435_p5 = pneg %p1434_p2  ;;  %p1441_p6 = por %p1440_p13, %p1439_p4 }
  0x6b   : > { %p1442_p10 = pnand %p1441_p6, %p1435_p5 }
  0x6d   : > { %1445 = shalt.err (!%p1442_p10)
}
  0x6e   : > { %1278 = dma.hbm_to_vmem [thread:$0]  (!%p1753_p11), %s1748_s20, 256, %s1751_s11, %s264_s19  }
  0x6f   : > { %s286_s2 = scalar_lea.vmem [#allocation5], %s1742_s14  ;;  %s283_s12 = scalar_lea.sflag [#allocation6], %s282_s29 }
  0x70   : > { %s294_s17 = sshll.u32 %s286_s2, 4  ;;  %s1446_s21 = scalar_lea.hbm %s1760_s15, 256  ;;  %s295_s17 = int_to_ptr.vmem [resolvable:$true] %s294_s17 }
  0x71   : > { %p1447_p4 = scmp.ne.s32.totalorder %s1760_s15, %s1446_s21  ;;  %s1451_s3 = scalar_lea.hbm %s2209_s1, 512 }
  0x72   : > { %p1452_p3 = scmp.lt.u32.totalorder %s1760_s15, %s2209_s1  ;;  %p1453_p7 = scmp.lt.u32.totalorder %s1451_s3, %s1446_s21 }
  0x73   : > { %p1449_p5 = pnand %p1447_p4, %p1418_p0  ;;  %p1455_p12 = scmp.lt.u32.totalorder %s1446_s21, %s1760_s15 }
  0x74   : > { %p1454_p9 = por %p1453_p7, %p1452_p3 }
  0x75   : > { %p1450_p1 = pneg %p1449_p5 }
  0x76   : > { %p1456_p2 = por %p1455_p12, %p1454_p9 }
  0x78   : > { %p1457_p13 = pnand %p1456_p2, %p1450_p1 }
  0x7a   : > { %1460 = shalt.err (!%p1457_p13)
}
  0x7b   : > { %s1461_s14 = scalar_lea.vmem %s295_s17, 256  ;;  %s1561_s20 = smov [#allocation5]  }
  0x7c   : > { %p1462_p6 = scmp.ne.s32.totalorder %s295_s17, %s1461_s14  ;;  %s1466_s11 = sshll.u32 %s1561_s20, 4  ;;  %s1467_s11 = int_to_ptr.vmem [resolvable:$false] %s1466_s11 }
  0x7d   : > { %s1468_s29 = scalar_lea.vmem %s1467_s11, 512  ;;  %p1469_p5 = scmp.lt.s32.totalorder %s295_s17, %s1467_s11 }
  0x7e   : > { %p1464_p10 = pnand %p1462_p6, %p1418_p0  ;;  %p1470_p8 = scmp.lt.s32.totalorder %s1468_s29, %s1461_s14 }
  0x80   : > { %p1465_p4 = pneg %p1464_p10  ;;  %p1471_p3 = por %p1470_p8, %p1469_p5 }
  0x82   : > { %p1472_p7 = pnand %p1471_p3, %p1465_p4 }
  0x84   : > { %1475 = shalt.err (!%p1472_p7)
}
  0x85   : > { %1281 = dma.hbm_to_vmem [thread:$0]  (!%p1753_p11), %s1760_s15, 256, %s295_s17, %s283_s12  }
  0x86   : > { %p2234_p1 = scmp.ne.s32.totalorder %s2226_s9, 0 }
  0x87   : > { %s1813_s19 = sand.u32 (!%p2234_p1), 1, %s1546_s25   ;;  %p2235_p8 = scmp.ne.s32.totalorder (!%p2234_p1), %s2224_s30, 0 }
  0x88   : > { %303 = sbr.rel (%p2234_p1) target bundleno = 979 (0x3d3), region = 48  ;;  %s1816_s2 = sshll.u32 (!%p2234_p1), %s1813_s19, 4 }
  0x89   : > { %s306_s21 = scalar_lea.sflag (!%p2234_p1), [#allocation3], %s1813_s19  ;;  %s309_s10 = scalar_lea.vmem (!%p2234_p1), [#allocation2], %s1816_s2 }
  0x8f   : > { %1521 = dma.done.wait (%p2235_p8), %s306_s21, 256  }
  0x90   : > { %1523 = vsyncadd (%p2235_p8), %s306_s21, 4294967040  ;;  %s314_s9 = sand.u32 1, %s1634_s28   ;;  %s318_s15 = scalar_lea.vmem [#allocation5], %s1816_s2 }
  0x91   : > { %s315_s22 = scalar_lea.sflag [#allocation6], %s314_s9 }
  0x92   : > { %1525 = dma.done.wait (%p2235_p8), %s315_s22, 256  }
  0x93   : > { %1527 = vsyncadd (%p2235_p8), %s315_s22, 4294967040  ;;  %p2236_p11 = scmp.eq.s32.totalorder %s1634_s28, 0 }
  0x95   : > { %1529 = dma.done.wait (%p2236_p11), [#allocation6], 384   ;;  %p2237_p0 = pmov %p2236_p11 }
  0x97   : > { %1531 = vsyncadd (%p2237_p0), [#allocation6], 4294966912  ;;  %p2238_p9 = pmov %p2237_p0 }
  0x98   : > { %p2239_p12 = pmov %p2237_p0 }
  0x99   : > { %1533 = dma.done.wait (%p2238_p9), [#allocation9], 256  }
  0x9a   : > { %1535 = vsyncadd (%p2239_p12), [#allocation9], 4294967040  ;;  %v1838_v0 = vld [vmem:[%s309_s10 + $0x8] sm:$0xff]  ;;  %s1562_s17 = smov 16   ;;  %s1563_s30 = smov 17   ;;  %v1844_v1 = vld [vmem:[%s309_s10] sm:$0xff]  ;;  %v382_v7 = vlaneseq }
  0x9b   : > { %392 = vrot.lane.b32.xlu1 %v1838_v0, %s1562_s17  ;;  %371 = vrot.lane.b32.xlu0 %v1838_v0, %s1563_s30  ;;  %v1850_v2 = vld [vmem:[%s318_s15] sm:$0xff]  ;;  %v1852_v3 = vld [vmem:[%s318_s15 + $0x8] sm:$0xff]  ;;  %s1564_s12 = smov 15   ;;  %s1565_s18 = smov 1   ;;  %v1569_v4 = vmov 0.0   ;;  %v1571_v5 = vmov 0  }
  0x9c   : > { %s1566_s3 = smov 127   ;;  %s1567_s23 = smov 113   ;;  %627 = vmatprep.mubr.f32.mxu1 %v1569_v4  ;;  %808 = vmatprep.mubr.f32.mxu0 %v1569_v4  ;;  %v536_v6 = vld [vmem:[%s2213_s5 + $0x8] sm:$0xff]  ;;  %v1915_v8 = vshrl.u32 %v382_v7, 7  ;;  %v1922_v11 = vld [vmem:[%s2214_s6] sm:$0xff]  ;;  %vm397_vm0 = vcmask 130048  }
  0x9d   : > { %s1568_s26 = smov 112   ;;  %s1570_s14 = smov 111   ;;  %1338 = vset.pattern.permute.xlu0 %v1571_v5  ;;  %1339 = vset.pattern.permute.xlu1 %v1571_v5  ;;  %v1927_v12 = vld [vmem:[%s2214_s6 + $0x8] sm:$0xff]  ;;  %vm377_vm1 = vcmask 138240   ;;  %vm417_vm2 = vcmask 121856   ;;  %vm437_vm3 = vcmask 7168  }
  0x9e   : > { %v404_v9 = vsub.s32 1, %v1915_v8  ;;  %v384_v10 = vsub.s32 0, %v1915_v8  ;;  %v424_v39 = vsub.s32 2, %v1915_v8  ;;  %v444_v40 = vsub.s32 3, %v1915_v8  ;;  %p2240_p13 = scmp.ne.s32.totalorder %s2231_s16, 0  ;;  %s1572_s22 = smov [#allocation10]  }
  0x9f   : > { %395 = vrot.lane.b32.xlu1 %v1844_v1, %s1562_s17  ;;  %375 = vrot.lane.b32.xlu0 %v1844_v1, %s1563_s30  ;;  %vm456_vm4 = vcmask 1039360   ;;  %vm476_vm5 = vcmask 924672   ;;  %vm496_vm6 = vcmask 916480   ;;  %vm516_vm7 = vcmask 908288   ;;  %s1480_s15 = sshll.u32 %s1572_s22, 4  ;;  %s1481_s15 = int_to_ptr.vmem [resolvable:$false] %s1480_s15 }
  0xa0   : > { %v1930_v15 = vrot.slane %v1922_v11, %v404_v9  ;;  %v1933_v16 = vrot.slane %v1922_v11, %v384_v10  ;;  %v1936_v17 = vrot.slane %v1927_v12, %v384_v10  ;;  %v1939_v18 = vrot.slane %v1927_v12, %v404_v9  ;;  %s1482_s20 = scalar_lea.vmem %s1481_s15, 512 }
  0xa1   : > { %v1960_v49 = vrot.slane %v1922_v11, %v424_v39  ;;  %v1963_v50 = vrot.slane %v1927_v12, %v424_v39  ;;  %v1966_v51 = vrot.slane %v1922_v11, %v444_v40  ;;  %v1969_v52 = vrot.slane %v1927_v12, %v444_v40 }
  0xa2   : > { %v464_v9 = vsub.s32 5, %v1915_v8  ;;  %vm553_vm8 = vcmask 588800  }
  0xa3   : > { %651 = vrot.lane.b32.xlu1 %v1850_v2, %s1563_s30  ;;  %647 = vrot.lane.b32.xlu0 %v1852_v3, %s1563_s30 }
  0xa7   : > { %662 = vrot.lane.b32.xlu1 %v1850_v2, %s1562_s17  ;;  %659 = vrot.lane.b32.xlu0 %v1852_v3, %s1562_s17 }
  0xab   : > { %415 = vrot.lane.b32.xlu1 %v1844_v1, %s1564_s12  ;;  %412 = vrot.lane.b32.xlu0 %v1838_v0, %s1564_s12 }
  0xaf   : > { %435 = vrot.lane.b32.xlu1 %v1844_v1, %s1565_s18  ;;  %432 = vrot.lane.b32.xlu0 %v1838_v0, %s1565_s18 }
  0xb3   : > { %673 = vrot.lane.b32.xlu1 %v1850_v2, %s1564_s12  ;;  %670 = vrot.lane.b32.xlu0 %v1852_v3, %s1564_s12 }
  0xb7   : > { %684 = vrot.lane.b32.xlu1 %v1850_v2, %s1565_s18  ;;  %681 = vrot.lane.b32.xlu0 %v1852_v3, %s1565_s18 }
  0xbb   : > { %454 = vrot.lane.b32.xlu1 %v1838_v0, %s1566_s3  ;;  %452 = vrot.lane.b32.xlu0 %v1844_v1, %s1566_s3 }
  0xbf   : > { %694 = vrot.lane.b32.xlu1 %v1852_v3, %s1566_s3  ;;  %692 = vrot.lane.b32.xlu0 %v1850_v2, %s1566_s3 }
  0xc3   : > { %474 = vrot.lane.b32.xlu1 %v1838_v0, %s1567_s23  ;;  %472 = vrot.lane.b32.xlu0 %v1844_v1, %s1567_s23 }
  0xc7   : > { %494 = vrot.lane.b32.xlu1 %v1838_v0, %s1568_s26  ;;  %492 = vrot.lane.b32.xlu0 %v1844_v1, %s1568_s26 }
  0xcb   : > { %705 = vrot.lane.b32.xlu1 %v1852_v3, %s1567_s23  ;;  %703 = vrot.lane.b32.xlu0 %v1850_v2, %s1567_s23 }
  0xcf   : > { %716 = vrot.lane.b32.xlu1 %v1852_v3, %s1568_s26  ;;  %714 = vrot.lane.b32.xlu0 %v1850_v2, %s1568_s26 }
  0xd3   : > { %514 = vrot.lane.b32.xlu1 %v1838_v0, %s1570_s14  ;;  %512 = vrot.lane.b32.xlu0 %v1844_v1, %s1570_s14 }
  0xd7   : > { %727 = vrot.lane.b32.xlu1 %v1852_v3, %s1570_s14  ;;  %725 = vrot.lane.b32.xlu0 %v1850_v2, %s1570_s14 }
  0xdb   : > { %545 = vperm.xlu0 %1338, %v536_v6  }
 0x10d   : > { %v393_v13 = vpop.permute.xlu1 %392  ;;  %v372_v14 = vpop.permute.xlu0 %371 }
 0x111   : > { %v396_v19 = vpop.permute.xlu1 %395  ;;  %v376_v20 = vpop.permute.xlu0 %375 }
 0x112   : > { %v398_v21 = vsel %vm397_vm0, %v396_v19, %v393_v13  ;;  %v401_v22 = vsel %vm397_vm0, %v393_v13, %v396_v19  ;;  %v378_v23 = vsel %vm377_vm1, %v376_v20, %v372_v14  ;;  %v381_v24 = vsel %vm377_vm1, %v372_v14, %v376_v20 }
 0x113   : > { %v410_v25 = vmul.f32 %v1930_v15, %v401_v22  ;;  %v390_v26 = vmul.f32 %v1933_v16, %v381_v24  ;;  %v391_v27 = vmul.f32 %v1936_v17, %v378_v23  ;;  %v411_v28 = vmul.f32 %v1939_v18, %v398_v21 }
 0x114   : > { %v1985_v22 = vrot.slane %v1922_v11, %v464_v9  ;;  %v1988_v23 = vrot.slane %v1927_v12, %v464_v9 }
 0x115   : > { %v652_v29 = vpop.permute.xlu1 %651  ;;  %v648_v30 = vpop.permute.xlu0 %647  ;;  %v1194_v31 = vpack.c.bf16 %v411_v28, %v391_v27  ;;  %v1196_v32 = vpack.c.bf16 %v410_v25, %v390_v26 }
 0x116   : > { %v653_v33 = vsel %vm377_vm1, %v652_v29, %v648_v30  ;;  %v656_v34 = vsel %vm377_vm1, %v648_v30, %v652_v29 }
 0x117   : > { %1195 = vmatprep.subr.bf16.mxu1 %v1194_v31  ;;  %v657_v41 = vmul.f32 %v656_v34, %v1933_v16  ;;  %v658_v43 = vmul.f32 %v653_v33, %v1936_v17 }
 0x118   : > { %1197 = vmatpush1.bf16.msra.mxu1 %v1196_v32 }
 0x119   : > { %v663_v35 = vpop.permute.xlu1 %662  ;;  %v660_v36 = vpop.permute.xlu0 %659 }
 0x11a   : > { %v664_v37 = vsel %vm397_vm0, %v663_v35, %v660_v36  ;;  %v667_v38 = vsel %vm397_vm0, %v660_v36, %v663_v35 }
 0x11b   : > { %v668_v42 = vmul.f32 %v667_v38, %v1930_v15  ;;  %v669_v44 = vmul.f32 %v664_v37, %v1939_v18 }
 0x11d   : > { %v416_v45 = vpop.permute.xlu1 %415  ;;  %v413_v46 = vpop.permute.xlu0 %412  ;;  %v1210_v47 = vpack.c.bf16 %v669_v44, %v658_v43  ;;  %v1212_v48 = vpack.c.bf16 %v668_v42, %v657_v41  ;;  %v484_v42 = vsub.s32 6, %v1915_v8 }
 0x11e   : > { %v418_v53 = vsel %vm417_vm2, %v416_v45, %v413_v46  ;;  %v421_v54 = vsel %vm417_vm2, %v413_v46, %v416_v45  ;;  %v504_v45 = vsub.s32 7, %v1915_v8 }
 0x11f   : > { %1211 = vmatprep.subr.bf16.mxu0 %v1210_v47  ;;  %v430_v59 = vmul.f32 %v1960_v49, %v421_v54  ;;  %v431_v60 = vmul.f32 %v1963_v50, %v418_v53  ;;  %v2012_v53 = vrot.slane %v1927_v12, %v484_v42 }
 0x120   : > { %1213 = vmatpush1.bf16.msra.mxu0 %v1212_v48  ;;  %v2009_v48 = vrot.slane %v1922_v11, %v484_v42  ;;  %v2015_v54 = vrot.slane %v1922_v11, %v504_v45  ;;  %v2018_v8 = vrot.slane %v1927_v12, %v504_v45  ;;  %v533_v45 = vld [vmem:[#allocation7 + $0x8] sm:$0xff] }
 0x121   : > { %v436_v55 = vpop.permute.xlu1 %435  ;;  %v433_v56 = vpop.permute.xlu0 %432 }
 0x122   : > { %v438_v57 = vsel %vm437_vm3, %v436_v55, %v433_v56  ;;  %v441_v58 = vsel %vm437_vm3, %v433_v56, %v436_v55 }
 0x123   : > { %v450_v61 = vmul.f32 %v1966_v51, %v441_v58  ;;  %v451_v62 = vmul.f32 %v1969_v52, %v438_v57 }
 0x125   : > { %v674_v63 = vpop.permute.xlu1 %673  ;;  %v671_v5 = vpop.permute.xlu0 %670  ;;  %v1198_v6 = vpack.c.bf16 %v451_v62, %v431_v60  ;;  %v1200_v7 = vpack.c.bf16 %v450_v61, %v430_v59 }
 0x126   : > { %v675_v10 = vsel %vm417_vm2, %v674_v63, %v671_v5  ;;  %v678_v13 = vsel %vm417_vm2, %v671_v5, %v674_v63 }
 0x127   : > { %1199 = vmatprep.subr.bf16.mxu1 %v1198_v6  ;;  %v679_v24 = vmul.f32 %v678_v13, %v1960_v49  ;;  %v680_v25 = vmul.f32 %v675_v10, %v1963_v50 }
 0x128   : > { %1201 = vmatpush1.bf16.msra.mxu1 %v1200_v7 }
 0x129   : > { %v685_v14 = vpop.permute.xlu1 %684  ;;  %v682_v19 = vpop.permute.xlu0 %681 }
 0x12a   : > { %v686_v20 = vsel %vm437_vm3, %v685_v14, %v682_v19  ;;  %v689_v21 = vsel %vm437_vm3, %v682_v19, %v685_v14 }
 0x12b   : > { %v690_v26 = vmul.f32 %v689_v21, %v1966_v51  ;;  %v691_v27 = vmul.f32 %v686_v20, %v1969_v52 }
 0x12d   : > { %v455_v28 = vpop.permute.xlu1 %454  ;;  %v453_v29 = vpop.permute.xlu0 %452  ;;  %v1214_v30 = vpack.c.bf16 %v691_v27, %v680_v25  ;;  %v1216_v31 = vpack.c.bf16 %v690_v26, %v679_v24  ;;  %v2039_v27 = vld [vmem:[%s2214_s6 + $0x10] ss:$0 sm:$0xff] }
 0x12e   : > { %v457_v32 = vsel %vm456_vm4, %v453_v29, %v455_v28  ;;  %v461_v33 = vsel %vm456_vm4, %v455_v28, %v453_v29  ;;  %v2044_v28 = vld [vmem:[%s2214_s6 + $0x18] ss:$0 sm:$0xff] }
 0x12f   : > { %v470_v34 = vmul.f32 %v1985_v22, %v457_v32  ;;  %v471_v35 = vmul.f32 %v1988_v23, %v461_v33  ;;  %1215 = vmatprep.subr.bf16.mxu0 %v1214_v30 }
 0x130   : > { %1217 = vmatpush1.bf16.msra.mxu0 %v1216_v31 }
 0x131   : > { %v695_v36 = vpop.permute.xlu1 %694  ;;  %v693_v37 = vpop.permute.xlu0 %692  ;;  %v1202_v38 = vpack.c.bf16 %v471_v35, %v1838_v0  ;;  %v1204_v39 = vpack.c.bf16 %v470_v34, %v1844_v1 }
 0x132   : > { %v696_v40 = vsel %vm456_vm4, %v693_v37, %v695_v36  ;;  %v700_v41 = vsel %vm456_vm4, %v695_v36, %v693_v37  ;;  %v532_v37 = vld [vmem:[#allocation7] sm:$0xff] }
 0x133   : > { %v701_v43 = vmul.f32 %v696_v40, %v1985_v22  ;;  %v702_v44 = vmul.f32 %v700_v41, %v1988_v23  ;;  %1203 = vmatprep.subr.bf16.mxu1 %v1202_v38 }
 0x134   : > { %1205 = vmatpush1.bf16.msra.mxu1 %v1204_v39 }
 0x135   : > { %v475_v46 = vpop.permute.xlu1 %474  ;;  %v473_v47 = vpop.permute.xlu0 %472  ;;  %v1218_v0 = vpack.c.bf16 %v702_v44, %v1852_v3  ;;  %v1220_v1 = vpack.c.bf16 %v701_v43, %v1850_v2  ;;  %v736_v44 = vld [vmem:[#allocation8] sm:$0xff] }
 0x136   : > { %v477_v55 = vsel %vm476_vm5, %v473_v47, %v475_v46  ;;  %v481_v56 = vsel %vm476_vm5, %v475_v46, %v473_v47  ;;  %v737_v46 = vld [vmem:[#allocation8 + $0x8] sm:$0xff] }
 0x137   : > { %1219 = vmatprep.subr.bf16.mxu0 %v1218_v0  ;;  %v490_v61 = vmul.f32 %v2009_v48, %v477_v55  ;;  %v491_v62 = vmul.f32 %v2012_v53, %v481_v56 }
 0x138   : > { %1221 = vmatpush1.bf16.msra.mxu0 %v1220_v1 }
 0x139   : > { %v495_v57 = vpop.permute.xlu1 %494  ;;  %v493_v58 = vpop.permute.xlu0 %492 }
 0x13a   : > { %v497_v59 = vsel %vm496_vm6, %v493_v58, %v495_v57  ;;  %v501_v60 = vsel %vm496_vm6, %v495_v57, %v493_v58 }
 0x13b   : > { %v510_v11 = vmul.f32 %v2015_v54, %v497_v59  ;;  %v511_v12 = vmul.f32 %v2018_v8, %v501_v60 }
 0x13d   : > { %v706_v63 = vpop.permute.xlu1 %705  ;;  %v704_v5 = vpop.permute.xlu0 %703  ;;  %v1206_v6 = vpack.c.bf16 %v511_v12, %v491_v62  ;;  %v1208_v7 = vpack.c.bf16 %v510_v11, %v490_v61 }
 0x13e   : > { %v707_v9 = vsel %vm476_vm5, %v704_v5, %v706_v63  ;;  %v711_v10 = vsel %vm476_vm5, %v706_v63, %v704_v5 }
 0x13f   : > { %1207 = vmatprep.subr.bf16.mxu1 %v1206_v6  ;;  %v712_v21 = vmul.f32 %v707_v9, %v2009_v48  ;;  %v713_v24 = vmul.f32 %v711_v10, %v2012_v53 }
 0x140   : > { %1209 = vmatpush1.bf16.msra.mxu1 %v1208_v7 }
 0x141   : > { %v717_v13 = vpop.permute.xlu1 %716  ;;  %v715_v14 = vpop.permute.xlu0 %714 }
 0x142   : > { %v718_v19 = vsel %vm496_vm6, %v715_v14, %v717_v13  ;;  %v722_v20 = vsel %vm496_vm6, %v717_v13, %v715_v14 }
 0x143   : > { %v723_v25 = vmul.f32 %v718_v19, %v2015_v54  ;;  %v724_v26 = vmul.f32 %v722_v20, %v2018_v8  ;;  %v534_v20 = vld [vmem:[#allocation7 + $0x10] sm:$0xff] }
 0x145   : > { %v515_v29 = vpop.permute.xlu1 %514  ;;  %v513_v30 = vpop.permute.xlu0 %512  ;;  %v1222_v31 = vpack.c.bf16 %v724_v26, %v713_v24  ;;  %v1224_v32 = vpack.c.bf16 %v723_v25, %v712_v21  ;;  %v535_v21 = vld [vmem:[%s2213_s5] sm:$0xff]  ;;  %v537_v24 = vld [vmem:[%s2213_s5 + $0x10] sm:$0xff] }
 0x146   : > { %v517_v33 = vsel %vm516_vm7, %v513_v30, %v515_v29  ;;  %v521_v34 = vsel %vm516_vm7, %v515_v29, %v513_v30 }
 0x147   : > { %v530_v35 = vmul.f32 %v2039_v27, %v517_v33  ;;  %v531_v36 = vmul.f32 %v2044_v28, %v521_v34  ;;  %1223 = vmatprep.subr.bf16.mxu0 %v1222_v31 }
 0x148   : > { %1225 = vmatpush1.bf16.msra.mxu0 %v1224_v32 }
 0x149   : > { %v728_v38 = vpop.permute.xlu1 %727  ;;  %579 = vmatprep.subr.mxu1 %v531_v36  ;;  %v726_v39 = vpop.permute.xlu0 %725 }
 0x14a   : > { %v729_v40 = vsel %vm516_vm7, %v726_v39, %v728_v38  ;;  %v733_v41 = vsel %vm516_vm7, %v728_v38, %v726_v39  ;;  %580 = vmatpush1.msra.mxu1 %v530_v35 }
 0x14b   : > { %v734_v42 = vmul.f32 %v2039_v27, %v729_v40  ;;  %v735_v43 = vmul.f32 %v2044_v28, %v733_v41  ;;  %1176 = vmatmul.mubr.msk.f32.vlgmr.msra.gmra.mrb[0].mxu1 %vm553_vm8, %v532_v37 }
 0x14c   : > { %633 = vmatprep.mubr.f32.mxu1 %v1569_v4 }
 0x14d   : > { %760 = vmatprep.subr.mxu0 %v735_v43 }
 0x14e   : > { %761 = vmatpush1.msra.mxu0 %v734_v42 }
 0x14f   : > { %1179 = vmatmul.mubr.msk.f32.vlgmr.msra.gmra.mrb[0].mxu0 %vm553_vm8, %v736_v44  ;;  %1177 = vmatmul.mubr.msk.f32.gmra.mrb[2].mxu1 %vm553_vm8, %v533_v45 }
 0x150   : > { %814 = vmatprep.mubr.f32.mxu0 %v1569_v4  ;;  %639 = vmatprep.mubr.f32.mxu1 %v1569_v4 }
 0x153   : > { %1180 = vmatmul.mubr.msk.f32.gmra.mrb[2].mxu0 %vm553_vm8, %v737_v46  ;;  %1178 = vmatmul.mubr.msk.f32.gmra.mrb[4].mxu1 %vm553_vm8, %v534_v20 }
 0x154   : > { %1009 = vmatprep.mubr.f32.mxu0 %v1569_v4 }
 0x15a   : > { %v546_v1 = vpop.permute.xlu0 %545 }
 0x21e   : > { %v2062_v47 = vpop.f32.mrb[0].mxu1 }
 0x21f   : > { %v2064_v0 = vpop.f32.mrb[1].mxu1 }
 0x222   : > { %v2066_v55 = vpop.f32.mrb[0].mxu0  ;;  %v635_v56 = vpop.f32.mrb[2].mxu1 }
 0x223   : > { %v2068_v57 = vpop.f32.mrb[1].mxu0  ;;  %v637_v58 = vpop.f32.mrb[3].mxu1  ;;  %v636_v59 = vadd.f32 %v635_v56, %v546_v1 }
 0x224   : > { %v638_v60 = vadd.f32 %v637_v58, %v546_v1 }
 0x226   : > { %v816_v61 = vpop.f32.mrb[2].mxu0 }
 0x227   : > { %v835_v62 = vadd.f32 %v816_v61, %v636_v59  ;;  %v818_v11 = vpop.f32.mrb[3].mxu0 }
 0x228   : > { %v836_v12 = vadd.f32 %v818_v11, %v638_v60 }
 0x229   : > { %v1183_v63 = vmul.f32 -1.442695, %v835_v62 }
 0x22a   : > { %v1184_v5 = vmul.f32 -1.442695, %v836_v12 }
 0x22b   : > { %1340 = vpow2.f32 %v1183_v63 }
 0x22c   : > { %1342 = vpow2.f32 %v1184_v5 }
 0x235   : > { %v1341_v4 = vpop.eup %1340 }
 0x236   : > { %v1343_v6 = vpop.eup %1342  ;;  %v843_v7 = vadd.f32 1.0, %v1341_v4 }
 0x237   : > { %v844_v9 = vadd.f32 1.0, %v1343_v6 }
 0x238   : > { %1344 = vrcp.f32 %v843_v7 }
 0x239   : > { %1346 = vrcp.f32 %v844_v9 }
 0x242   : > { %v1345_v10 = vpop.eup %1344 }
 0x243   : > { %v2071_v13 = vmul.f32 %v1345_v10, %v1850_v2  ;;  %v1347_v14 = vpop.eup %1346 }
 0x244   : > { %v2078_v19 = vmul.f32 %v1347_v14, %v1852_v3 }
 0x245   : > { %897 = vrot.lane.b32.xlu0 %v2071_v13, %s1566_s3  ;;  %856 = vrot.lane.b32.xlu1 %v2071_v13, %s1563_s30 }
 0x249   : > { %864 = vrot.lane.b32.xlu0 %v2078_v19, %s1562_s17  ;;  %867 = vrot.lane.b32.xlu1 %v2071_v13, %s1562_s17 }
 0x24d   : > { %875 = vrot.lane.b32.xlu0 %v2078_v19, %s1564_s12  ;;  %878 = vrot.lane.b32.xlu1 %v2071_v13, %s1564_s12 }
 0x251   : > { %886 = vrot.lane.b32.xlu0 %v2078_v19, %s1565_s18  ;;  %889 = vrot.lane.b32.xlu1 %v2071_v13, %s1565_s18 }
 0x255   : > { %908 = vrot.lane.b32.xlu0 %v2071_v13, %s1567_s23  ;;  %852 = vrot.lane.b32.xlu1 %v2078_v19, %s1563_s30 }
 0x259   : > { %919 = vrot.lane.b32.xlu0 %v2071_v13, %s1568_s26  ;;  %899 = vrot.lane.b32.xlu1 %v2078_v19, %s1566_s3 }
 0x25d   : > { %930 = vrot.lane.b32.xlu0 %v2071_v13, %s1570_s14  ;;  %910 = vrot.lane.b32.xlu1 %v2078_v19, %s1567_s23 }
 0x261   : > { %540 = vperm.xlu0 %1338, %v535_v21   ;;  %921 = vrot.lane.b32.xlu1 %v2078_v19, %s1568_s26  ;;  %s1193_s26 = sshll.u32 %s1634_s28, 8  ;;  %s1031_s28 = scalar_lea.sflag [#allocation4], %s1813_s19 }
 0x262   : > { %s2164_s9 = scalar_lea.hbm %s2215_s7, %s1193_s26 }
 0x265   : > { %932 = vrot.lane.b32.xlu1 %v2078_v19, %s1570_s14  ;;  %s361_s14 = scalar_lea.vmem [#allocation10], %s1816_s2 }
 0x266   : > { %s1045_s29 = sshll.u32 %s361_s14, 4  ;;  %s2166_s29 = int_to_ptr.vmem [resolvable:$true] %s1045_s29 }
 0x267   : > { %s1476_s2 = scalar_lea.vmem %s2166_s29, 256  ;;  %p1483_p4 = scmp.lt.s32.totalorder %s2166_s29, %s1481_s15 }
 0x268   : > { %p1477_p2 = scmp.ne.s32.totalorder %s2166_s29, %s1476_s2  ;;  %p1484_p5 = scmp.lt.s32.totalorder %s1482_s20, %s1476_s2 }
 0x269   : > { %550 = vperm.xlu1 %1339, %v537_v24  }
 0x26a   : > { %p1478_p6 = pnand %p1477_p2, %p2240_p13  ;;  %p1485_p3 = por %p1484_p5, %p1483_p4 }
 0x26c   : > { %p1479_p10 = pneg %p1478_p6 }
 0x26e   : > { %p1486_p7 = pnand %p1485_p3, %p1479_p10 }
 0x2b7   : > { %v898_v25 = vpop.permute.xlu0 %897  ;;  %v857_v26 = vpop.permute.xlu1 %856 }
 0x2bb   : > { %v865_v29 = vpop.permute.xlu0 %864  ;;  %v868_v30 = vpop.permute.xlu1 %867 }
 0x2bc   : > { %v872_v35 = vsel %vm397_vm0, %v865_v29, %v868_v30  ;;  %v869_v36 = vsel %vm397_vm0, %v868_v30, %v865_v29 }
 0x2bd   : > { %v873_v38 = vmul.f32 %v872_v35, %v1930_v15  ;;  %v874_v40 = vmul.f32 %v869_v36, %v1939_v18 }
 0x2bf   : > { %v876_v31 = vpop.permute.xlu0 %875  ;;  %v879_v32 = vpop.permute.xlu1 %878 }
 0x2c0   : > { %v880_v41 = vsel %vm417_vm2, %v879_v32, %v876_v31  ;;  %v883_v56 = vsel %vm417_vm2, %v876_v31, %v879_v32  ;;  %v641_v32 = vpop.f32.mrb[4].mxu1 }
 0x2c1   : > { %v885_v15 = vmul.f32 %v880_v41, %v1963_v50 }
 0x2c3   : > { %v887_v33 = vpop.permute.xlu0 %886  ;;  %v890_v34 = vpop.permute.xlu1 %889 }
 0x2c4   : > { %v891_v37 = vsel %vm437_vm3, %v890_v34, %v887_v33  ;;  %v894_v44 = vsel %vm437_vm3, %v887_v33, %v890_v34  ;;  %v643_v33 = vpop.f32.mrb[5].mxu1 }
 0x2c5   : > { %v896_v45 = vmul.f32 %v891_v37, %v1969_v52  ;;  %v895_v61 = vmul.f32 %v894_v44, %v1966_v51 }
 0x2c7   : > { %v853_v39 = vpop.permute.xlu1 %852  ;;  %v909_v58 = vpop.permute.xlu0 %908 }
 0x2c8   : > { %v858_v42 = vsel %vm377_vm1, %v857_v26, %v853_v39  ;;  %v861_v43 = vsel %vm377_vm1, %v853_v39, %v857_v26 }
 0x2c9   : > { %v862_v46 = vmul.f32 %v861_v43, %v1933_v16  ;;  %v863_v1 = vmul.f32 %v858_v42, %v1936_v17  ;;  %v1230_v16 = vpack.c.bf16 %v896_v45, %v885_v15  ;;  %v884_v17 = vmul.f32 %v883_v56, %v1960_v49 }
 0x2cb   : > { %v1228_v18 = vpack.c.bf16 %v873_v38, %v862_v46  ;;  %v900_v59 = vpop.permute.xlu1 %899  ;;  %v1226_v60 = vpack.c.bf16 %v874_v40, %v863_v1  ;;  %v1232_v50 = vpack.c.bf16 %v895_v61, %v884_v17  ;;  %v920_v5 = vpop.permute.xlu0 %919 }
 0x2cc   : > { %v905_v62 = vsel %vm456_vm4, %v900_v59, %v898_v25  ;;  %v901_v11 = vsel %vm456_vm4, %v898_v25, %v900_v59 }
 0x2cd   : > { %v907_v52 = vmul.f32 %v905_v62, %v1988_v23  ;;  %1227 = vmatprep.subr.bf16.mxu0 %v1226_v60  ;;  %v906_v63 = vmul.f32 %v901_v11, %v1985_v22 }
 0x2ce   : > { %1229 = vmatpush1.bf16.msra.mxu0 %v1228_v18 }
 0x2cf   : > { %1231 = vmatprep.subr.bf16.mxu0 %v1230_v16  ;;  %v911_v12 = vpop.permute.xlu1 %910  ;;  %v1234_v4 = vpack.c.bf16 %v907_v52, %v2078_v19  ;;  %v1236_v7 = vpack.c.bf16 %v906_v63, %v2071_v13  ;;  %v931_v20 = vpop.permute.xlu0 %930 }
 0x2d0   : > { %v912_v51 = vsel %vm476_vm5, %v909_v58, %v911_v12  ;;  %v916_v6 = vsel %vm476_vm5, %v911_v12, %v909_v58 }
 0x2d1   : > { %v917_v10 = vmul.f32 %v912_v51, %v2009_v48  ;;  %v918_v22 = vmul.f32 %v916_v6, %v2012_v53  ;;  %v941_v53 = vld [vmem:[%s2212_s4] sm:$0xff] }
 0x2d2   : > { %1233 = vmatpush1.bf16.msra.mxu0 %v1232_v50 }
 0x2d3   : > { %1235 = vmatprep.subr.bf16.mxu0 %v1234_v4  ;;  %v922_v23 = vpop.permute.xlu1 %921 }
 0x2d4   : > { %v923_v49 = vsel %vm496_vm6, %v920_v5, %v922_v23  ;;  %v927_v9 = vsel %vm496_vm6, %v922_v23, %v920_v5 }
 0x2d5   : > { %v928_v14 = vmul.f32 %v923_v49, %v2015_v54  ;;  %v929_v19 = vmul.f32 %v927_v9, %v2018_v8 }
 0x2d6   : > { %1237 = vmatpush1.bf16.msra.mxu0 %v1236_v7 }
 0x2d7   : > { %v1240_v21 = vpack.c.bf16 %v928_v14, %v917_v10  ;;  %v933_v24 = vpop.permute.xlu1 %932  ;;  %v1238_v25 = vpack.c.bf16 %v929_v19, %v918_v22 }
 0x2d8   : > { %v938_v26 = vsel %vm516_vm7, %v933_v24, %v931_v20  ;;  %v934_v13 = vsel %vm516_vm7, %v931_v20, %v933_v24 }
 0x2d9   : > { %v940_v29 = vmul.f32 %v2044_v28, %v938_v26  ;;  %1239 = vmatprep.subr.bf16.mxu0 %v1238_v25  ;;  %v939_v48 = vmul.f32 %v2039_v27, %v934_v13 }
 0x2da   : > { %1241 = vmatpush1.bf16.msra.mxu0 %v1240_v21 }
 0x2db   : > { %961 = vmatprep.subr.mxu0 %v940_v29 }
 0x2de   : > { %962 = vmatpush1.msra.mxu0 %v939_v48 }
 0x2df   : > { %1185 = vmatmul.mubr.msk.f32.vlgmr.msra.gmra.mrb[4].mxu0 %vm553_vm8, %v941_v53 }
 0x2e0   : > { %v541_v54 = vpop.permute.xlu0 %540 }
 0x2e1   : > { %v630_v8 = vadd.f32 %v2062_v47, %v541_v54  ;;  %v632_v30 = vadd.f32 %v2064_v0, %v541_v54 }
 0x2e3   : > { %v821_v31 = vadd.f32 %v2066_v55, %v630_v8  ;;  %v822_v28 = vadd.f32 %v2068_v57, %v632_v30 }
 0x2e5   : > { %v1181_v34 = vmul.f32 -1.442695, %v821_v31  ;;  %v1182_v27 = vmul.f32 -1.442695, %v822_v28 }
 0x2e7   : > { %1348 = vpow2.f32 %v1181_v34 }
 0x2e8   : > { %1350 = vpow2.f32 %v1182_v27  ;;  %v551_v39 = vpop.permute.xlu1 %550 }
 0x2e9   : > { %v642_v40 = vadd.f32 %v641_v32, %v551_v39  ;;  %v644_v47 = vadd.f32 %v643_v33, %v551_v39 }
 0x2f1   : > { %v1349_v35 = vpop.eup %1348 }
 0x2f2   : > { %v1351_v36 = vpop.eup %1350  ;;  %v829_v37 = vadd.f32 1.0, %v1349_v35 }
 0x2f3   : > { %v830_v38 = vadd.f32 1.0, %v1351_v36 }
 0x2f4   : > { %1352 = vrcp.f32 %v829_v37 }
 0x2f5   : > { %1354 = vrcp.f32 %v830_v38 }
 0x2fe   : > { %v1353_v42 = vpop.eup %1352 }
 0x2ff   : > { %v1355_v43 = vpop.eup %1354  ;;  %v1020_v44 = vsub.f32 1.0, %v1353_v42 }
 0x300   : > { %v1021_v45 = vsub.f32 1.0, %v1355_v43 }
 0x301   : > { %v1022_v15 = vmul.f32 %v1020_v44, %v1850_v2 }
 0x302   : > { %v1023_v18 = vmul.f32 %v1021_v45, %v1852_v3 }
 0x3b2   : > { %v1011_v0 = vpop.f32.mrb[4].mxu0 }
 0x3b3   : > { %v1016_v55 = vadd.f32 %v1011_v0, %v642_v40  ;;  %v1013_v57 = vpop.f32.mrb[5].mxu0 }
 0x3b4   : > { %v1017_v41 = vadd.f32 %v1013_v57, %v644_v47 }
 0x3b5   : > { %1356 = vtanh.f32 %v1016_v55 }
 0x3b6   : > { %1358 = vtanh.f32 %v1017_v41 }
 0x3bf   : > { %v1357_v46 = vpop.eup %1356 }
 0x3c0   : > { %v1359_v1 = vpop.eup %1358  ;;  %v1024_v56 = vmul.f32 %v1357_v46, %v1353_v42 }
 0x3c1   : > { %v1025_v58 = vmul.f32 %v1359_v1, %v1355_v43 }
 0x3c2   : > { %v1026_v59 = vadd.f32 %v1024_v56, %v1022_v15 }
 0x3c3   : > { %v1027_v60 = vadd.f32 %v1025_v58, %v1023_v18 }
 0x3c4   : > { %1028 = vst [vmem:[%s361_s14] sm:$0xff] %v1026_v59 }
 0x3c5   : > { %1029 = vst [vmem:[%s361_s14 + $0x8] sm:$0xff] %v1027_v60 }
 0x3c6   : > { %1489 = shalt.err (!%p1486_p7)
}
 0x3c7   : > { %s1490_s19 = scalar_lea.hbm %s2164_s9, 256  ;;  %s1494_s12 = scalar_lea.hbm %s2215_s7, 512 }
 0x3c8   : > { %p1491_p1 = scmp.ne.s32.totalorder %s2164_s9, %s1490_s19  ;;  %p1495_p0 = scmp.lt.u32.totalorder %s2164_s9, %s2215_s7 }
 0x3c9   : > { %p1496_p9 = scmp.lt.u32.totalorder %s1494_s12, %s1490_s19  ;;  %p1498_p2 = scmp.lt.u32.totalorder %s1490_s19, %s2164_s9 }
 0x3ca   : > { %p1492_p8 = pnand %p1491_p1, %p2240_p13 }
 0x3cb   : > { %p1497_p12 = por %p1496_p9, %p1495_p0 }
 0x3cc   : > { %p1493_p11 = pneg %p1492_p8 }
 0x3cd   : > { %p1499_p6 = por %p1498_p2, %p1497_p12 }
 0x3cf   : > { %p1500_p10 = pnand %p1499_p6, %p1493_p11 }
 0x3d1   : > { %1503 = shalt.err (!%p1500_p10)
}
 0x3d2   : > { %1266 = dma.vmem_to_hbm [thread:$0]  (%p2240_p13), %s2166_s29, 256, %s2164_s9, %s1031_s28  }
 0x3d3 PF: > { %s1057_s3 = sand.u32 1, %s1542_s24   ;;  %p2241_p4 = scmp.ne.s32.totalorder %s2225_s8, 0 }
 0x3d4   : > { %p2242_p5 = scmp.ge.s32.totalorder %s1554_s27, 2  ;;  %s1058_s23 = scalar_lea.sflag [#allocation4], %s1057_s3 }
 0x3d6   : > { %p1283_p3 = pnand %p2242_p5, %p2241_p4 }
 0x3d8   : > { %1537 = dma.done.wait (!%p1283_p3), %s1058_s23, 256  }
 0x3d9   : > { %1539 = vsyncadd (!%p1283_p3), %s1058_s23, 4294967040  ;;  %s2243_s26 = sld [smem:[#allocation16_spill]]  ;;  %s2244_s14 = sld [smem:[#allocation17_spill]] }
 0x3da   : > { %p24_p7 = scmp.ge.s32.totalorder %s1723_s13, 4   ;;  %s2245_s24 = smov %s1546_s25 }
 0x3db   : > { %s2248_s27 = smov %s1723_s13 }
 0x3dc   :  { %26 = sbr.rel (!%p24_p7) target bundleno = 11 (0xb), region = 114 }
 0x3df   : > { %s2246_s25 = smov %s2243_s26  ;;  %s2247_s26 = smov %s2244_s14 }
 0x3e3   :  { %1063 = vsyncpa [#allocation3], 1 }
 0x3e4   :  { %1065 = vsyncpa [#allocation3 + $0x1], 1 }
 0x3e5   :  { %1066 = vsyncpa [#allocation6], 1 }
 0x3e6   :  { %1068 = vsyncpa [#allocation6 + $0x1], 1 }
 0x3e7   :  { %1069 = vsyncpa [#allocation9], 1 }
 0x3e8   :  { %1070 = vsyncpa [#allocation4], 1 }
 0x3e9   :  { %1072 = vsyncpa [#allocation4 + $0x1], 1 }

</bundles_post_ra>
